<compile_context>
chip_gen: v7x
topology: tpu7x:2x2x1
jax: 0.10.0
libtpu: 0.0.40
codegen_flags: <defaults>
</compile_context>

<pallas_src>
import functools

import jax
import jax.numpy as jnp
from jax.experimental import pallas as pl
from jax.experimental.pallas import tpu as pltpu

P = 128          # padded size for edges / message-slots / literals (all <= 128 here)
_NEG = -1e30     # "minus infinity" for the masked segment max; keep finite (0 * -inf == NaN)


def bp_kernel(a1p_ref, a2t_ref, wtf_ref, sstp_ref, wfneg_ref, wfs_ref, invc_ref,
              out_ref, *, n_rounds):
    f32 = jnp.float32
    bf16 = jnp.bfloat16

    def dot_hilo(rows, w_ref):
        """Stacked hi/lo bf16 matvec: ONE MXU push for all rows and their residuals.

        RHS matrices are integer counts / one-hots (exact in bf16 for counts <= 256); splitting
        each f32 LHS row into a bf16 hi part plus the bf16 residual recovers ~f32 accuracy while
        the extra rows ride the same MXU pass (no extra dependent latency).
        """
        parts = []
        for r in rows:
            hi = r.astype(bf16).astype(f32)
            parts.append(hi)
            parts.append(r - hi)
        lhs = jnp.concatenate(parts, axis=0).astype(bf16)        # (2*len(rows), P) bf16
        res = jnp.dot(lhs, w_ref[...], preferred_element_type=f32)
        return [res[2 * i:2 * i + 1, :] + res[2 * i + 1:2 * i + 2, :]
                for i in range(len(rows))]

    inv_cnt = invc_ref[...]               # (1, P): 1/|segment| for real edges, 0 otherwise
    nonempty = inv_cnt > 0.0
    wf_neg = wfneg_ref[...]               # (e_pad8, P): 0 for member slots, -1e30 otherwise
    wf_s = wfs_ref[...]                   # (e_pad8, P): one-hot slot->edge membership

    def round_body(feat):
        # c2l_msg and its pair-swapped partner in ONE dot against [A1T | A1T@Ppair]
        (mp,) = dot_hilo([feat], a1p_ref)                        # (1, 2P)
        msg, partner = mp[:, :P], mp[:, P:]
        # per-(var, clause) pairwise logsumexp normalization -> l2c message
        mx = jnp.maximum(msg, partner)
        norm = mx + jnp.log(jnp.exp(msg - mx) + jnp.exp(partner - mx))
        l2c = msg - norm
        # l2c_msg_aggr: scatter_sum of l2c into message slots
        (aggr,) = dot_hilo([l2c], a2t_ref)                       # (1, P) per message slot
        # scatter_logsumexp over message slots -> per-edge feature:
        #   per-edge segment max via additive mask + lane reduce, gathered back to slots,
        #   exp on ONE (1,128) row, then segment sum and (cnt*smax) share ONE dot against Wtf.
        smax_col = jnp.max(aggr + wf_neg, axis=1, keepdims=True)     # (e_pad8, 1)
        smax_slot = jnp.sum(wf_s * smax_col, axis=0, keepdims=True)  # (1, P) per slot
        ex = jnp.exp(aggr - smax_slot)
        ssum, csmax = dot_hilo([ex, smax_slot], wtf_ref)
        # (cnt*smax) * (1/cnt) differs from the exact per-edge max by ~1 ulp; the add-back shift
        # is therefore infinitesimally inconsistent with the subtracted shift -- harmless here.
        smax_row = csmax * inv_cnt
        return jnp.where(nonempty, smax_row + jnp.log(jnp.maximum(ssum, 1e-30)), 0.0)

    feat = jnp.zeros((1, P), f32)         # c2l_edges_feat, lane-dense row layout
    if n_rounds <= 8:
        for _ in range(n_rounds):         # full unroll for small fixed round counts
            feat = round_body(feat)
    else:                                 # bound code size / live ranges for long horizons
        feat = jax.lax.fori_loop(0, n_rounds, lambda _, f: round_body(f), feat)

    # literal beliefs + softmax over the two literals of each variable: ONE dot vs [ST | ST@Plit]
    (lp,) = dot_hilo([feat], sstp_ref)                           # (1, 2P)
    l_logit, p_logit = lp[:, :P], lp[:, P:]
    mx = jnp.maximum(l_logit, p_logit)
    ea = jnp.exp(l_logit - mx)
    eb = jnp.exp(p_logit - mx)
    # approx reciprocal: ~2^-12 relative error, well inside the test tolerance
    out_ref[...] = ea * pl.reciprocal(ea + eb, approx=True)


def _build_instance(c2l_rep, c2l_scat, l2c_aggr_rep, l2c_aggr_scat, l2c_scat, sign_l,
                    *, num_edges, l_size, e_pad8):
    """Dense one-hot scatter matrices for one BP instance (vmapped over the batch)."""
    f32 = jnp.float32
    M = l2c_scat.shape[-1]
    e_ids = jnp.arange(num_edges)
    m_ids = jnp.arange(M)

    # scatter_sum(x[rep], scat)[n] == (x_row @ AT)[n]  with AT[e, n] = #{j: rep[j]==e, scat[j]==n}
    A1T = jnp.zeros((P, P), f32).at[c2l_rep, c2l_scat].add(1.0)               # (E, E)
    A2T = jnp.zeros((P, P), f32).at[l2c_aggr_rep, l2c_aggr_scat].add(1.0)     # (E, M)
    Wf = jnp.zeros((P, P), f32).at[l2c_scat, m_ids].add(1.0)                  # (E, M) membership
    ST = jnp.zeros((P, P), f32).at[e_ids, sign_l].add(1.0)                    # (E, L)

    # Fold pair-swap permutations as column gathers (right-mul by a permutation matrix);
    # columns past num_edges / l_size are all-zero so the identity tail is harmless.
    perm_e = jnp.arange(P).at[:num_edges].set(e_ids ^ 1)
    perm_l = jnp.arange(P).at[:l_size].set(jnp.arange(l_size) ^ 1)
    A1P = jnp.concatenate([A1T, A1T[:, perm_e]], axis=1).astype(jnp.bfloat16)   # (P, 2P)
    SSTP = jnp.concatenate([ST, ST[:, perm_l]], axis=1).astype(jnp.bfloat16)    # (P, 2P)

    Wf_s = Wf[:e_pad8, :]
    wf_neg = jnp.where(Wf_s > 0.5, 0.0, _NEG).astype(f32)          # additive segment-max mask
    cnt = jnp.sum(Wf, axis=1)                                      # messages per edge segment
    inv_cnt = jnp.where(cnt > 0.5, 1.0 / jnp.maximum(cnt, 1.0), 0.0).reshape(1, P)
    return (A1P, A2T.astype(jnp.bfloat16), Wf.T.astype(jnp.bfloat16), SSTP,
            wf_neg, Wf_s, inv_cnt)


@functools.partial(jax.jit, static_argnames=("num_edges", "l_size", "n_rounds"))
def bp_forward(c2l_rep, c2l_scat, l2c_aggr_rep, l2c_aggr_scat, l2c_scat, sign_l,
               *, num_edges, l_size, n_rounds):
    """Batched BP forward. Every index array has a leading batch axis (B, ...).

    Returns (B, num_vars, 2) softmax probabilities (non model-counting branch).
    """
    B = c2l_rep.shape[0]
    M = l2c_scat.shape[-1]
    assert num_edges % 2 == 0 and l_size % 2 == 0
    assert max(num_edges, M, l_size) <= P
    # bf16-exactness of the count matrices / cnt requires integer counts <= 256
    assert c2l_rep.shape[-1] <= 256 and l2c_aggr_rep.shape[-1] <= 256 and M <= 256
    e_pad8 = ((num_edges + 7) // 8) * 8

    build = functools.partial(_build_instance, num_edges=num_edges, l_size=l_size,
                              e_pad8=e_pad8)
    A1P, A2T, Wtf, SSTP, wf_neg, Wf_s, inv_cnt = jax.vmap(build)(
        c2l_rep, c2l_scat, l2c_aggr_rep, l2c_aggr_scat, l2c_scat, sign_l)

    kernel = functools.partial(bp_kernel, n_rounds=n_rounds)

    def sq(shape):   # per-instance block with the batch axis squeezed out of the kernel view
        return pl.BlockSpec((None,) + shape, lambda b: (b,) + (0,) * len(shape))

    out = pl.pallas_call(
        kernel,
        out_shape=jax.ShapeDtypeStruct((B, 1, P), jnp.float32),
        grid=(B,),
        in_specs=[sq((P, 2 * P)), sq((P, P)), sq((P, P)), sq((P, 2 * P)),
                  sq((e_pad8, P)), sq((e_pad8, P)), sq((1, P))],
        out_specs=sq((1, P)),
        compiler_params=pltpu.CompilerParams(dimension_semantics=("parallel",)),
    )(A1P, A2T, Wtf, SSTP, wf_neg, Wf_s, inv_cnt)

    # (B, num_vars, 2) softmax over the two literals of each variable — matches PyTorch output.
    return out[:, 0, :l_size].reshape(B, -1, 2)


def bp_reference(c2l_rep, c2l_scat, l2c_aggr_rep, l2c_aggr_scat, l2c_scat, sign_l,
                 *, num_edges, l_size, n_rounds):
    """Pure-JAX reference mirroring the PyTorch forward (non model-counting branch)."""
    M = int(l2c_scat.shape[0])
    c2l = jnp.zeros((num_edges,), jnp.float32)
    for _ in range(n_rounds):
        c2l_msg = jax.ops.segment_sum(c2l[c2l_rep], c2l_scat, num_segments=num_edges)
        c2v = c2l_msg.reshape(num_edges // 2, 2)
        norm = jax.scipy.special.logsumexp(c2v, axis=1, keepdims=True)
        l2c = (c2v - norm).reshape(num_edges)
        aggr = jax.ops.segment_sum(l2c[l2c_aggr_rep], l2c_aggr_scat, num_segments=M)
        smax = jax.ops.segment_max(aggr, l2c_scat, num_segments=num_edges)
        ssum = jax.ops.segment_sum(jnp.exp(aggr - smax[l2c_scat]), l2c_scat,
                                   num_segments=num_edges)
        c2l = smax + jnp.log(ssum)
    l_logit = jax.ops.segment_sum(c2l, sign_l, num_segments=l_size)
    return jax.nn.softmax(l_logit.reshape(-1, 2), axis=1)


if __name__ == "__main__":
    key = jax.random.PRNGKey(0)
    B = 2                        # two independent BP instances, split across TCs on v7x
    num_vars = 8
    l_size = 2 * num_vars        # 16 literals
    num_edges = 24               # even (edge 2i / 2i+1 are the two polarities of one incidence)
    n_rounds = 4
    n_c2l, n_aggr, n_extra = 48, 64, 16

    ks = jax.random.split(key, 6)
    c2l_rep = jax.random.randint(ks[0], (B, n_c2l), 0, num_edges)
    c2l_scat = jax.random.randint(ks[1], (B, n_c2l), 0, num_edges)
    extra = jax.random.randint(ks[2], (B, n_extra), 0, num_edges)
    l2c_scat = jnp.concatenate(
        [jnp.broadcast_to(jnp.arange(num_edges), (B, num_edges)), extra], axis=1)
    M = int(l2c_scat.shape[1])                                   # 40 message slots
    l2c_aggr_rep = jax.random.randint(ks[3], (B, n_aggr), 0, num_edges)
    l2c_aggr_scat = jax.random.randint(ks[4], (B, n_aggr), 0, M)
    sign_l = jax.random.randint(ks[5], (B, num_edges), 0, l_size)

    probs = bp_forward(c2l_rep, c2l_scat, l2c_aggr_rep, l2c_aggr_scat, l2c_scat, sign_l,
                       num_edges=num_edges, l_size=l_size, n_rounds=n_rounds)
    probs = jax.block_until_ready(probs)
    assert probs.shape == (B, num_vars, 2), probs.shape

    max_err = 0.0
    for b in range(B):
        ref = bp_reference(c2l_rep[b], c2l_scat[b], l2c_aggr_rep[b], l2c_aggr_scat[b],
                           l2c_scat[b], sign_l[b],
                           num_edges=num_edges, l_size=l_size, n_rounds=n_rounds)
        max_err = max(max_err, float(jnp.max(jnp.abs(probs[b] - ref))))
    assert max_err < 2e-2, f"mismatch vs reference: max_err={max_err}"
    print("KERNEL_OK")
</pallas_src>

<mosaic_0001>
module attributes {stable_mosaic.version = 11 : i64} {
  func.func private @main(%arg0: i32) attributes {dimension_semantics = [#tpu.dimension_semantics<core_parallel>], iteration_bounds = array<i64: 2>, tpu.core_type = #tpu.core_type<sc_scalar_subcore>, window_params = []} {
    return
  }
}

module attributes {stable_mosaic.version = 11 : i64} {
  func.func private @main(%arg0: i32) attributes {dimension_semantics = [#tpu.dimension_semantics<core_parallel>], iteration_bounds = array<i64: 2>, tpu.core_type = #tpu.core_type<sc_scalar_subcore>, window_params = []} {
    return
  }
}

module attributes {stable_mosaic.version = 11 : i64} {
  func.func @bp_kernel(%arg0: i32, %arg1: memref<1x128x256xbf16, #tpu.memory_space<vmem>>, %arg2: memref<1x128x128xbf16, #tpu.memory_space<vmem>>, %arg3: memref<1x128x128xbf16, #tpu.memory_space<vmem>>, %arg4: memref<1x128x256xbf16, #tpu.memory_space<vmem>>, %arg5: memref<1x24x128xf32, #tpu.memory_space<vmem>>, %arg6: memref<1x24x128xf32, #tpu.memory_space<vmem>>, %arg7: memref<1x1x128xf32, #tpu.memory_space<vmem>>, %arg8: memref<1x1x128xf32, #tpu.memory_space<vmem>>) attributes {dimension_semantics = [#tpu.dimension_semantics<parallel>], iteration_bounds = array<i64: 2>, scalar_prefetch = 0 : i64, scratch_operands = 0 : i64, tpu.core_type = #tpu.core_type<tc>, window_params = [{transform_indices = @transform_0, window_bounds = array<i64: 1, 128, 256>}, {transform_indices = @transform_1, window_bounds = array<i64: 1, 128, 128>}, {transform_indices = @transform_2, window_bounds = array<i64: 1, 128, 128>}, {transform_indices = @transform_3, window_bounds = array<i64: 1, 128, 256>}, {transform_indices = @transform_4, window_bounds = array<i64: 1, 24, 128>}, {transform_indices = @transform_5, window_bounds = array<i64: 1, 24, 128>}, {transform_indices = @transform_6, window_bounds = array<i64: 1, 1, 128>}, {transform_indices = @transform_7, window_bounds = array<i64: 1, 1, 128>}]} {
    %c0 = arith.constant 0 : index
    %c0_0 = arith.constant 0 : index
    %c0_1 = arith.constant 0 : index
    %0 = vector.load %arg7[%c0, %c0_0, %c0_1] : memref<1x1x128xf32, #tpu.memory_space<vmem>>, vector<1x1x128xf32>
    %1 = vector.shape_cast %0 : vector<1x1x128xf32> to vector<1x128xf32>
    %cst = arith.constant 0.000000e+00 : f32
    %2 = vector.broadcast %cst : f32 to vector<1x128xf32>
    %3 = arith.cmpf ogt, %1, %2 : vector<1x128xf32>
    %c0_2 = arith.constant 0 : index
    %c0_3 = arith.constant 0 : index
    %c0_4 = arith.constant 0 : index
    %4 = vector.load %arg5[%c0_2, %c0_3, %c0_4] : memref<1x24x128xf32, #tpu.memory_space<vmem>>, vector<1x24x128xf32>
    %5 = vector.shape_cast %4 : vector<1x24x128xf32> to vector<24x128xf32>
    %c0_5 = arith.constant 0 : index
    %c0_6 = arith.constant 0 : index
    %c0_7 = arith.constant 0 : index
    %6 = vector.load %arg6[%c0_5, %c0_6, %c0_7] : memref<1x24x128xf32, #tpu.memory_space<vmem>>, vector<1x24x128xf32>
    %7 = vector.shape_cast %6 : vector<1x24x128xf32> to vector<24x128xf32>
    %cst_8 = arith.constant 0.000000e+00 : f32
    %8 = vector.broadcast %cst_8 : f32 to vector<1x128xf32>
    %9 = arith.truncf %8 : vector<1x128xf32> to vector<1x128xbf16>
    %10 = arith.extf %9 : vector<1x128xbf16> to vector<1x128xf32>
    %11 = arith.subf %8, %10 : vector<1x128xf32>
    %12 = tpu.concatenate %10, %11 in 0 : vector<1x128xf32>, vector<1x128xf32> -> vector<2x128xf32>
    %13 = arith.truncf %12 : vector<2x128xf32> to vector<2x128xbf16>
    %c0_9 = arith.constant 0 : index
    %c0_10 = arith.constant 0 : index
    %c0_11 = arith.constant 0 : index
    %14 = vector.load %arg1[%c0_9, %c0_10, %c0_11] : memref<1x128x256xbf16, #tpu.memory_space<vmem>>, vector<1x128x256xbf16>
    %15 = vector.shape_cast %14 : vector<1x128x256xbf16> to vector<128x256xbf16>
    %cst_12 = arith.constant dense<0.000000e+00> : vector<2x256xf32>
    %16 = tpu.matmul %13, %15, %cst_12 {dimension_numbers = #tpu.dot_dimension_numbers<[1], [0], [0], [1], [0, 0, 1, 1], [], []>} : vector<2x128xbf16>, vector<128x256xbf16>, vector<2x256xf32> -> vector<2x256xf32>
    %17 = vector.extract_strided_slice %16 {offsets = [0, 0], sizes = [1, 256], strides = [1, 1]} : vector<2x256xf32> to vector<1x256xf32>
    %18 = vector.extract_strided_slice %16 {offsets = [1, 0], sizes = [1, 256], strides = [1, 1]} : vector<2x256xf32> to vector<1x256xf32>
    %19 = arith.addf %17, %18 : vector<1x256xf32>
    %20 = vector.extract_strided_slice %19 {offsets = [0, 0], sizes = [1, 128], strides = [1, 1]} : vector<1x256xf32> to vector<1x128xf32>
    %21 = vector.extract_strided_slice %19 {offsets = [0, 128], sizes = [1, 128], strides = [1, 1]} : vector<1x256xf32> to vector<1x128xf32>
    %22 = arith.maximumf %20, %21 : vector<1x128xf32>
    %23 = arith.subf %20, %22 : vector<1x128xf32>
    %24 = math.exp %23 : vector<1x128xf32>
    %25 = arith.subf %21, %22 : vector<1x128xf32>
    %26 = math.exp %25 : vector<1x128xf32>
    %27 = arith.addf %24, %26 : vector<1x128xf32>
    %28 = math.log %27 : vector<1x128xf32>
    %29 = arith.addf %22, %28 : vector<1x128xf32>
    %30 = arith.subf %20, %29 : vector<1x128xf32>
    %31 = arith.truncf %30 : vector<1x128xf32> to vector<1x128xbf16>
    %32 = arith.extf %31 : vector<1x128xbf16> to vector<1x128xf32>
    %33 = arith.subf %30, %32 : vector<1x128xf32>
    %34 = tpu.concatenate %32, %33 in 0 : vector<1x128xf32>, vector<1x128xf32> -> vector<2x128xf32>
    %35 = arith.truncf %34 : vector<2x128xf32> to vector<2x128xbf16>
    %c0_13 = arith.constant 0 : index
    %c0_14 = arith.constant 0 : index
    %c0_15 = arith.constant 0 : index
    %36 = vector.load %arg2[%c0_13, %c0_14, %c0_15] : memref<1x128x128xbf16, #tpu.memory_space<vmem>>, vector<1x128x128xbf16>
    %37 = vector.shape_cast %36 : vector<1x128x128xbf16> to vector<128x128xbf16>
    %cst_16 = arith.constant dense<0.000000e+00> : vector<2x128xf32>
    %38 = tpu.matmul %35, %37, %cst_16 {dimension_numbers = #tpu.dot_dimension_numbers<[1], [0], [0], [1], [0, 0, 1, 1], [], []>} : vector<2x128xbf16>, vector<128x128xbf16>, vector<2x128xf32> -> vector<2x128xf32>
    %39 = vector.extract_strided_slice %38 {offsets = [0, 0], sizes = [1, 128], strides = [1, 1]} : vector<2x128xf32> to vector<1x128xf32>
    %40 = vector.extract_strided_slice %38 {offsets = [1, 0], sizes = [1, 128], strides = [1, 1]} : vector<2x128xf32> to vector<1x128xf32>
    %41 = arith.addf %39, %40 : vector<1x128xf32>
    %42 = vector.broadcast %41 : vector<1x128xf32> to vector<24x128xf32>
    %43 = arith.addf %42, %5 : vector<24x128xf32>
    %cst_17 = arith.constant dense<0xFF800000> : vector<24xf32>
    %44 = vector.multi_reduction <maximumf>, %43, %cst_17 [1] : vector<24x128xf32> to vector<24xf32>
    %45 = vector.shape_cast %44 : vector<24xf32> to vector<24x1xf32>
    %46 = vector.broadcast %45 : vector<24x1xf32> to vector<24x128xf32>
    %47 = arith.mulf %7, %46 : vector<24x128xf32>
    %cst_18 = arith.constant dense<0.000000e+00> : vector<128xf32>
    %48 = vector.multi_reduction <add>, %47, %cst_18 [0] : vector<24x128xf32> to vector<128xf32>
    %49 = vector.shape_cast %48 : vector<128xf32> to vector<1x128xf32>
    %50 = arith.subf %41, %49 : vector<1x128xf32>
    %51 = math.exp %50 : vector<1x128xf32>
    %52 = arith.truncf %51 : vector<1x128xf32> to vector<1x128xbf16>
    %53 = arith.extf %52 : vector<1x128xbf16> to vector<1x128xf32>
    %54 = arith.subf %51, %53 : vector<1x128xf32>
    %55 = arith.truncf %49 : vector<1x128xf32> to vector<1x128xbf16>
    %56 = arith.extf %55 : vector<1x128xbf16> to vector<1x128xf32>
    %57 = arith.subf %49, %56 : vector<1x128xf32>
    %58 = tpu.concatenate %53, %54, %56, %57 in 0 : vector<1x128xf32>, vector<1x128xf32>, vector<1x128xf32>, vector<1x128xf32> -> vector<4x128xf32>
    %59 = arith.truncf %58 : vector<4x128xf32> to vector<4x128xbf16>
    %c0_19 = arith.constant 0 : index
    %c0_20 = arith.constant 0 : index
    %c0_21 = arith.constant 0 : index
    %60 = vector.load %arg3[%c0_19, %c0_20, %c0_21] : memref<1x128x128xbf16, #tpu.memory_space<vmem>>, vector<1x128x128xbf16>
    %61 = vector.shape_cast %60 : vector<1x128x128xbf16> to vector<128x128xbf16>
    %cst_22 = arith.constant dense<0.000000e+00> : vector<4x128xf32>
    %62 = tpu.matmul %59, %61, %cst_22 {dimension_numbers = #tpu.dot_dimension_numbers<[1], [0], [0], [1], [0, 0, 1, 1], [], []>} : vector<4x128xbf16>, vector<128x128xbf16>, vector<4x128xf32> -> vector<4x128xf32>
    %63 = vector.extract_strided_slice %62 {offsets = [0, 0], sizes = [1, 128], strides = [1, 1]} : vector<4x128xf32> to vector<1x128xf32>
    %64 = vector.extract_strided_slice %62 {offsets = [1, 0], sizes = [1, 128], strides = [1, 1]} : vector<4x128xf32> to vector<1x128xf32>
    %65 = arith.addf %63, %64 : vector<1x128xf32>
    %66 = vector.extract_strided_slice %62 {offsets = [2, 0], sizes = [1, 128], strides = [1, 1]} : vector<4x128xf32> to vector<1x128xf32>
    %67 = vector.extract_strided_slice %62 {offsets = [3, 0], sizes = [1, 128], strides = [1, 1]} : vector<4x128xf32> to vector<1x128xf32>
    %68 = arith.addf %66, %67 : vector<1x128xf32>
    %69 = arith.mulf %68, %1 : vector<1x128xf32>
    %cst_23 = arith.constant 1.000000e-30 : f32
    %70 = vector.broadcast %cst_23 : f32 to vector<1x128xf32>
    %71 = arith.maximumf %65, %70 : vector<1x128xf32>
    %72 = math.log %71 : vector<1x128xf32>
    %73 = arith.addf %69, %72 : vector<1x128xf32>
    %cst_24 = arith.constant 0.000000e+00 : f32
    %74 = vector.broadcast %cst_24 : f32 to vector<1x128xf32>
    %75 = arith.select %3, %73, %74 : vector<1x128xi1>, vector<1x128xf32>
    %76 = arith.truncf %75 : vector<1x128xf32> to vector<1x128xbf16>
    %77 = arith.extf %76 : vector<1x128xbf16> to vector<1x128xf32>
    %78 = arith.subf %75, %77 : vector<1x128xf32>
    %79 = tpu.concatenate %77, %78 in 0 : vector<1x128xf32>, vector<1x128xf32> -> vector<2x128xf32>
    %80 = arith.truncf %79 : vector<2x128xf32> to vector<2x128xbf16>
    %c0_25 = arith.constant 0 : index
    %c0_26 = arith.constant 0 : index
    %c0_27 = arith.constant 0 : index
    %81 = vector.load %arg1[%c0_25, %c0_26, %c0_27] : memref<1x128x256xbf16, #tpu.memory_space<vmem>>, vector<1x128x256xbf16>
    %82 = vector.shape_cast %81 : vector<1x128x256xbf16> to vector<128x256xbf16>
    %cst_28 = arith.constant dense<0.000000e+00> : vector<2x256xf32>
    %83 = tpu.matmul %80, %82, %cst_28 {dimension_numbers = #tpu.dot_dimension_numbers<[1], [0], [0], [1], [0, 0, 1, 1], [], []>} : vector<2x128xbf16>, vector<128x256xbf16>, vector<2x256xf32> -> vector<2x256xf32>
    %84 = vector.extract_strided_slice %83 {offsets = [0, 0], sizes = [1, 256], strides = [1, 1]} : vector<2x256xf32> to vector<1x256xf32>
    %85 = vector.extract_strided_slice %83 {offsets = [1, 0], sizes = [1, 256], strides = [1, 1]} : vector<2x256xf32> to vector<1x256xf32>
    %86 = arith.addf %84, %85 : vector<1x256xf32>
    %87 = vector.extract_strided_slice %86 {offsets = [0, 0], sizes = [1, 128], strides = [1, 1]} : vector<1x256xf32> to vector<1x128xf32>
    %88 = vector.extract_strided_slice %86 {offsets = [0, 128], sizes = [1, 128], strides = [1, 1]} : vector<1x256xf32> to vector<1x128xf32>
    %89 = arith.maximumf %87, %88 : vector<1x128xf32>
    %90 = arith.subf %87, %89 : vector<1x128xf32>
    %91 = math.exp %90 : vector<1x128xf32>
    %92 = arith.subf %88, %89 : vector<1x128xf32>
    %93 = math.exp %92 : vector<1x128xf32>
    %94 = arith.addf %91, %93 : vector<1x128xf32>
    %95 = math.log %94 : vector<1x128xf32>
    %96 = arith.addf %89, %95 : vector<1x128xf32>
    %97 = arith.subf %87, %96 : vector<1x128xf32>
    %98 = arith.truncf %97 : vector<1x128xf32> to vector<1x128xbf16>
    %99 = arith.extf %98 : vector<1x128xbf16> to vector<1x128xf32>
    %100 = arith.subf %97, %99 : vector<1x128xf32>
    %101 = tpu.concatenate %99, %100 in 0 : vector<1x128xf32>, vector<1x128xf32> -> vector<2x128xf32>
    %102 = arith.truncf %101 : vector<2x128xf32> to vector<2x128xbf16>
    %c0_29 = arith.constant 0 : index
    %c0_30 = arith.constant 0 : index
    %c0_31 = arith.constant 0 : index
    %103 = vector.load %arg2[%c0_29, %c0_30, %c0_31] : memref<1x128x128xbf16, #tpu.memory_space<vmem>>, vector<1x128x128xbf16>
    %104 = vector.shape_cast %103 : vector<1x128x128xbf16> to vector<128x128xbf16>
    %cst_32 = arith.constant dense<0.000000e+00> : vector<2x128xf32>
    %105 = tpu.matmul %102, %104, %cst_32 {dimension_numbers = #tpu.dot_dimension_numbers<[1], [0], [0], [1], [0, 0, 1, 1], [], []>} : vector<2x128xbf16>, vector<128x128xbf16>, vector<2x128xf32> -> vector<2x128xf32>
    %106 = vector.extract_strided_slice %105 {offsets = [0, 0], sizes = [1, 128], strides = [1, 1]} : vector<2x128xf32> to vector<1x128xf32>
    %107 = vector.extract_strided_slice %105 {offsets = [1, 0], sizes = [1, 128], strides = [1, 1]} : vector<2x128xf32> to vector<1x128xf32>
    %108 = arith.addf %106, %107 : vector<1x128xf32>
    %109 = vector.broadcast %108 : vector<1x128xf32> to vector<24x128xf32>
    %110 = arith.addf %109, %5 : vector<24x128xf32>
    %cst_33 = arith.constant dense<0xFF800000> : vector<24xf32>
    %111 = vector.multi_reduction <maximumf>, %110, %cst_33 [1] : vector<24x128xf32> to vector<24xf32>
    %112 = vector.shape_cast %111 : vector<24xf32> to vector<24x1xf32>
    %113 = vector.broadcast %112 : vector<24x1xf32> to vector<24x128xf32>
    %114 = arith.mulf %7, %113 : vector<24x128xf32>
    %cst_34 = arith.constant dense<0.000000e+00> : vector<128xf32>
    %115 = vector.multi_reduction <add>, %114, %cst_34 [0] : vector<24x128xf32> to vector<128xf32>
    %116 = vector.shape_cast %115 : vector<128xf32> to vector<1x128xf32>
    %117 = arith.subf %108, %116 : vector<1x128xf32>
    %118 = math.exp %117 : vector<1x128xf32>
    %119 = arith.truncf %118 : vector<1x128xf32> to vector<1x128xbf16>
    %120 = arith.extf %119 : vector<1x128xbf16> to vector<1x128xf32>
    %121 = arith.subf %118, %120 : vector<1x128xf32>
    %122 = arith.truncf %116 : vector<1x128xf32> to vector<1x128xbf16>
    %123 = arith.extf %122 : vector<1x128xbf16> to vector<1x128xf32>
    %124 = arith.subf %116, %123 : vector<1x128xf32>
    %125 = tpu.concatenate %120, %121, %123, %124 in 0 : vector<1x128xf32>, vector<1x128xf32>, vector<1x128xf32>, vector<1x128xf32> -> vector<4x128xf32>
    %126 = arith.truncf %125 : vector<4x128xf32> to vector<4x128xbf16>
    %c0_35 = arith.constant 0 : index
    %c0_36 = arith.constant 0 : index
    %c0_37 = arith.constant 0 : index
    %127 = vector.load %arg3[%c0_35, %c0_36, %c0_37] : memref<1x128x128xbf16, #tpu.memory_space<vmem>>, vector<1x128x128xbf16>
    %128 = vector.shape_cast %127 : vector<1x128x128xbf16> to vector<128x128xbf16>
    %cst_38 = arith.constant dense<0.000000e+00> : vector<4x128xf32>
    %129 = tpu.matmul %126, %128, %cst_38 {dimension_numbers = #tpu.dot_dimension_numbers<[1], [0], [0], [1], [0, 0, 1, 1], [], []>} : vector<4x128xbf16>, vector<128x128xbf16>, vector<4x128xf32> -> vector<4x128xf32>
    %130 = vector.extract_strided_slice %129 {offsets = [0, 0], sizes = [1, 128], strides = [1, 1]} : vector<4x128xf32> to vector<1x128xf32>
    %131 = vector.extract_strided_slice %129 {offsets = [1, 0], sizes = [1, 128], strides = [1, 1]} : vector<4x128xf32> to vector<1x128xf32>
    %132 = arith.addf %130, %131 : vector<1x128xf32>
    %133 = vector.extract_strided_slice %129 {offsets = [2, 0], sizes = [1, 128], strides = [1, 1]} : vector<4x128xf32> to vector<1x128xf32>
    %134 = vector.extract_strided_slice %129 {offsets = [3, 0], sizes = [1, 128], strides = [1, 1]} : vector<4x128xf32> to vector<1x128xf32>
    %135 = arith.addf %133, %134 : vector<1x128xf32>
    %136 = arith.mulf %135, %1 : vector<1x128xf32>
    %cst_39 = arith.constant 1.000000e-30 : f32
    %137 = vector.broadcast %cst_39 : f32 to vector<1x128xf32>
    %138 = arith.maximumf %132, %137 : vector<1x128xf32>
    %139 = math.log %138 : vector<1x128xf32>
    %140 = arith.addf %136, %139 : vector<1x128xf32>
    %cst_40 = arith.constant 0.000000e+00 : f32
    %141 = vector.broadcast %cst_40 : f32 to vector<1x128xf32>
    %142 = arith.select %3, %140, %141 : vector<1x128xi1>, vector<1x128xf32>
    %143 = arith.truncf %142 : vector<1x128xf32> to vector<1x128xbf16>
    %144 = arith.extf %143 : vector<1x128xbf16> to vector<1x128xf32>
    %145 = arith.subf %142, %144 : vector<1x128xf32>
    %146 = tpu.concatenate %144, %145 in 0 : vector<1x128xf32>, vector<1x128xf32> -> vector<2x128xf32>
    %147 = arith.truncf %146 : vector<2x128xf32> to vector<2x128xbf16>
    %c0_41 = arith.constant 0 : index
    %c0_42 = arith.constant 0 : index
    %c0_43 = arith.constant 0 : index
    %148 = vector.load %arg1[%c0_41, %c0_42, %c0_43] : memref<1x128x256xbf16, #tpu.memory_space<vmem>>, vector<1x128x256xbf16>
    %149 = vector.shape_cast %148 : vector<1x128x256xbf16> to vector<128x256xbf16>
    %cst_44 = arith.constant dense<0.000000e+00> : vector<2x256xf32>
    %150 = tpu.matmul %147, %149, %cst_44 {dimension_numbers = #tpu.dot_dimension_numbers<[1], [0], [0], [1], [0, 0, 1, 1], [], []>} : vector<2x128xbf16>, vector<128x256xbf16>, vector<2x256xf32> -> vector<2x256xf32>
    %151 = vector.extract_strided_slice %150 {offsets = [0, 0], sizes = [1, 256], strides = [1, 1]} : vector<2x256xf32> to vector<1x256xf32>
    %152 = vector.extract_strided_slice %150 {offsets = [1, 0], sizes = [1, 256], strides = [1, 1]} : vector<2x256xf32> to vector<1x256xf32>
    %153 = arith.addf %151, %152 : vector<1x256xf32>
    %154 = vector.extract_strided_slice %153 {offsets = [0, 0], sizes = [1, 128], strides = [1, 1]} : vector<1x256xf32> to vector<1x128xf32>
    %155 = vector.extract_strided_slice %153 {offsets = [0, 128], sizes = [1, 128], strides = [1, 1]} : vector<1x256xf32> to vector<1x128xf32>
    %156 = arith.maximumf %154, %155 : vector<1x128xf32>
    %157 = arith.subf %154, %156 : vector<1x128xf32>
    %158 = math.exp %157 : vector<1x128xf32>
    %159 = arith.subf %155, %156 : vector<1x128xf32>
    %160 = math.exp %159 : vector<1x128xf32>
    %161 = arith.addf %158, %160 : vector<1x128xf32>
    %162 = math.log %161 : vector<1x128xf32>
    %163 = arith.addf %156, %162 : vector<1x128xf32>
    %164 = arith.subf %154, %163 : vector<1x128xf32>
    %165 = arith.truncf %164 : vector<1x128xf32> to vector<1x128xbf16>
    %166 = arith.extf %165 : vector<1x128xbf16> to vector<1x128xf32>
    %167 = arith.subf %164, %166 : vector<1x128xf32>
    %168 = tpu.concatenate %166, %167 in 0 : vector<1x128xf32>, vector<1x128xf32> -> vector<2x128xf32>
    %169 = arith.truncf %168 : vector<2x128xf32> to vector<2x128xbf16>
    %c0_45 = arith.constant 0 : index
    %c0_46 = arith.constant 0 : index
    %c0_47 = arith.constant 0 : index
    %170 = vector.load %arg2[%c0_45, %c0_46, %c0_47] : memref<1x128x128xbf16, #tpu.memory_space<vmem>>, vector<1x128x128xbf16>
    %171 = vector.shape_cast %170 : vector<1x128x128xbf16> to vector<128x128xbf16>
    %cst_48 = arith.constant dense<0.000000e+00> : vector<2x128xf32>
    %172 = tpu.matmul %169, %171, %cst_48 {dimension_numbers = #tpu.dot_dimension_numbers<[1], [0], [0], [1], [0, 0, 1, 1], [], []>} : vector<2x128xbf16>, vector<128x128xbf16>, vector<2x128xf32> -> vector<2x128xf32>
    %173 = vector.extract_strided_slice %172 {offsets = [0, 0], sizes = [1, 128], strides = [1, 1]} : vector<2x128xf32> to vector<1x128xf32>
    %174 = vector.extract_strided_slice %172 {offsets = [1, 0], sizes = [1, 128], strides = [1, 1]} : vector<2x128xf32> to vector<1x128xf32>
    %175 = arith.addf %173, %174 : vector<1x128xf32>
    %176 = vector.broadcast %175 : vector<1x128xf32> to vector<24x128xf32>
    %177 = arith.addf %176, %5 : vector<24x128xf32>
    %cst_49 = arith.constant dense<0xFF800000> : vector<24xf32>
    %178 = vector.multi_reduction <maximumf>, %177, %cst_49 [1] : vector<24x128xf32> to vector<24xf32>
    %179 = vector.shape_cast %178 : vector<24xf32> to vector<24x1xf32>
    %180 = vector.broadcast %179 : vector<24x1xf32> to vector<24x128xf32>
    %181 = arith.mulf %7, %180 : vector<24x128xf32>
    %cst_50 = arith.constant dense<0.000000e+00> : vector<128xf32>
    %182 = vector.multi_reduction <add>, %181, %cst_50 [0] : vector<24x128xf32> to vector<128xf32>
    %183 = vector.shape_cast %182 : vector<128xf32> to vector<1x128xf32>
    %184 = arith.subf %175, %183 : vector<1x128xf32>
    %185 = math.exp %184 : vector<1x128xf32>
    %186 = arith.truncf %185 : vector<1x128xf32> to vector<1x128xbf16>
    %187 = arith.extf %186 : vector<1x128xbf16> to vector<1x128xf32>
    %188 = arith.subf %185, %187 : vector<1x128xf32>
    %189 = arith.truncf %183 : vector<1x128xf32> to vector<1x128xbf16>
    %190 = arith.extf %189 : vector<1x128xbf16> to vector<1x128xf32>
    %191 = arith.subf %183, %190 : vector<1x128xf32>
    %192 = tpu.concatenate %187, %188, %190, %191 in 0 : vector<1x128xf32>, vector<1x128xf32>, vector<1x128xf32>, vector<1x128xf32> -> vector<4x128xf32>
    %193 = arith.truncf %192 : vector<4x128xf32> to vector<4x128xbf16>
    %c0_51 = arith.constant 0 : index
    %c0_52 = arith.constant 0 : index
    %c0_53 = arith.constant 0 : index
    %194 = vector.load %arg3[%c0_51, %c0_52, %c0_53] : memref<1x128x128xbf16, #tpu.memory_space<vmem>>, vector<1x128x128xbf16>
    %195 = vector.shape_cast %194 : vector<1x128x128xbf16> to vector<128x128xbf16>
    %cst_54 = arith.constant dense<0.000000e+00> : vector<4x128xf32>
    %196 = tpu.matmul %193, %195, %cst_54 {dimension_numbers = #tpu.dot_dimension_numbers<[1], [0], [0], [1], [0, 0, 1, 1], [], []>} : vector<4x128xbf16>, vector<128x128xbf16>, vector<4x128xf32> -> vector<4x128xf32>
    %197 = vector.extract_strided_slice %196 {offsets = [0, 0], sizes = [1, 128], strides = [1, 1]} : vector<4x128xf32> to vector<1x128xf32>
    %198 = vector.extract_strided_slice %196 {offsets = [1, 0], sizes = [1, 128], strides = [1, 1]} : vector<4x128xf32> to vector<1x128xf32>
    %199 = arith.addf %197, %198 : vector<1x128xf32>
    %200 = vector.extract_strided_slice %196 {offsets = [2, 0], sizes = [1, 128], strides = [1, 1]} : vector<4x128xf32> to vector<1x128xf32>
    %201 = vector.extract_strided_slice %196 {offsets = [3, 0], sizes = [1, 128], strides = [1, 1]} : vector<4x128xf32> to vector<1x128xf32>
    %202 = arith.addf %200, %201 : vector<1x128xf32>
    %203 = arith.mulf %202, %1 : vector<1x128xf32>
    %cst_55 = arith.constant 1.000000e-30 : f32
    %204 = vector.broadcast %cst_55 : f32 to vector<1x128xf32>
    %205 = arith.maximumf %199, %204 : vector<1x128xf32>
    %206 = math.log %205 : vector<1x128xf32>
    %207 = arith.addf %203, %206 : vector<1x128xf32>
    %cst_56 = arith.constant 0.000000e+00 : f32
    %208 = vector.broadcast %cst_56 : f32 to vector<1x128xf32>
    %209 = arith.select %3, %207, %208 : vector<1x128xi1>, vector<1x128xf32>
    %210 = arith.truncf %209 : vector<1x128xf32> to vector<1x128xbf16>
    %211 = arith.extf %210 : vector<1x128xbf16> to vector<1x128xf32>
    %212 = arith.subf %209, %211 : vector<1x128xf32>
    %213 = tpu.concatenate %211, %212 in 0 : vector<1x128xf32>, vector<1x128xf32> -> vector<2x128xf32>
    %214 = arith.truncf %213 : vector<2x128xf32> to vector<2x128xbf16>
    %c0_57 = arith.constant 0 : index
    %c0_58 = arith.constant 0 : index
    %c0_59 = arith.constant 0 : index
    %215 = vector.load %arg1[%c0_57, %c0_58, %c0_59] : memref<1x128x256xbf16, #tpu.memory_space<vmem>>, vector<1x128x256xbf16>
    %216 = vector.shape_cast %215 : vector<1x128x256xbf16> to vector<128x256xbf16>
    %cst_60 = arith.constant dense<0.000000e+00> : vector<2x256xf32>
    %217 = tpu.matmul %214, %216, %cst_60 {dimension_numbers = #tpu.dot_dimension_numbers<[1], [0], [0], [1], [0, 0, 1, 1], [], []>} : vector<2x128xbf16>, vector<128x256xbf16>, vector<2x256xf32> -> vector<2x256xf32>
    %218 = vector.extract_strided_slice %217 {offsets = [0, 0], sizes = [1, 256], strides = [1, 1]} : vector<2x256xf32> to vector<1x256xf32>
    %219 = vector.extract_strided_slice %217 {offsets = [1, 0], sizes = [1, 256], strides = [1, 1]} : vector<2x256xf32> to vector<1x256xf32>
    %220 = arith.addf %218, %219 : vector<1x256xf32>
    %221 = vector.extract_strided_slice %220 {offsets = [0, 0], sizes = [1, 128], strides = [1, 1]} : vector<1x256xf32> to vector<1x128xf32>
    %222 = vector.extract_strided_slice %220 {offsets = [0, 128], sizes = [1, 128], strides = [1, 1]} : vector<1x256xf32> to vector<1x128xf32>
    %223 = arith.maximumf %221, %222 : vector<1x128xf32>
    %224 = arith.subf %221, %223 : vector<1x128xf32>
    %225 = math.exp %224 : vector<1x128xf32>
    %226 = arith.subf %222, %223 : vector<1x128xf32>
    %227 = math.exp %226 : vector<1x128xf32>
    %228 = arith.addf %225, %227 : vector<1x128xf32>
    %229 = math.log %228 : vector<1x128xf32>
    %230 = arith.addf %223, %229 : vector<1x128xf32>
    %231 = arith.subf %221, %230 : vector<1x128xf32>
    %232 = arith.truncf %231 : vector<1x128xf32> to vector<1x128xbf16>
    %233 = arith.extf %232 : vector<1x128xbf16> to vector<1x128xf32>
    %234 = arith.subf %231, %233 : vector<1x128xf32>
    %235 = tpu.concatenate %233, %234 in 0 : vector<1x128xf32>, vector<1x128xf32> -> vector<2x128xf32>
    %236 = arith.truncf %235 : vector<2x128xf32> to vector<2x128xbf16>
    %c0_61 = arith.constant 0 : index
    %c0_62 = arith.constant 0 : index
    %c0_63 = arith.constant 0 : index
    %237 = vector.load %arg2[%c0_61, %c0_62, %c0_63] : memref<1x128x128xbf16, #tpu.memory_space<vmem>>, vector<1x128x128xbf16>
    %238 = vector.shape_cast %237 : vector<1x128x128xbf16> to vector<128x128xbf16>
    %cst_64 = arith.constant dense<0.000000e+00> : vector<2x128xf32>
    %239 = tpu.matmul %236, %238, %cst_64 {dimension_numbers = #tpu.dot_dimension_numbers<[1], [0], [0], [1], [0, 0, 1, 1], [], []>} : vector<2x128xbf16>, vector<128x128xbf16>, vector<2x128xf32> -> vector<2x128xf32>
    %240 = vector.extract_strided_slice %239 {offsets = [0, 0], sizes = [1, 128], strides = [1, 1]} : vector<2x128xf32> to vector<1x128xf32>
    %241 = vector.extract_strided_slice %239 {offsets = [1, 0], sizes = [1, 128], strides = [1, 1]} : vector<2x128xf32> to vector<1x128xf32>
    %242 = arith.addf %240, %241 : vector<1x128xf32>
    %243 = vector.broadcast %242 : vector<1x128xf32> to vector<24x128xf32>
    %244 = arith.addf %243, %5 : vector<24x128xf32>
    %cst_65 = arith.constant dense<0xFF800000> : vector<24xf32>
    %245 = vector.multi_reduction <maximumf>, %244, %cst_65 [1] : vector<24x128xf32> to vector<24xf32>
    %246 = vector.shape_cast %245 : vector<24xf32> to vector<24x1xf32>
    %247 = vector.broadcast %246 : vector<24x1xf32> to vector<24x128xf32>
    %248 = arith.mulf %7, %247 : vector<24x128xf32>
    %cst_66 = arith.constant dense<0.000000e+00> : vector<128xf32>
    %249 = vector.multi_reduction <add>, %248, %cst_66 [0] : vector<24x128xf32> to vector<128xf32>
    %250 = vector.shape_cast %249 : vector<128xf32> to vector<1x128xf32>
    %251 = arith.subf %242, %250 : vector<1x128xf32>
    %252 = math.exp %251 : vector<1x128xf32>
    %253 = arith.truncf %252 : vector<1x128xf32> to vector<1x128xbf16>
    %254 = arith.extf %253 : vector<1x128xbf16> to vector<1x128xf32>
    %255 = arith.subf %252, %254 : vector<1x128xf32>
    %256 = arith.truncf %250 : vector<1x128xf32> to vector<1x128xbf16>
    %257 = arith.extf %256 : vector<1x128xbf16> to vector<1x128xf32>
    %258 = arith.subf %250, %257 : vector<1x128xf32>
    %259 = tpu.concatenate %254, %255, %257, %258 in 0 : vector<1x128xf32>, vector<1x128xf32>, vector<1x128xf32>, vector<1x128xf32> -> vector<4x128xf32>
    %260 = arith.truncf %259 : vector<4x128xf32> to vector<4x128xbf16>
    %c0_67 = arith.constant 0 : index
    %c0_68 = arith.constant 0 : index
    %c0_69 = arith.constant 0 : index
    %261 = vector.load %arg3[%c0_67, %c0_68, %c0_69] : memref<1x128x128xbf16, #tpu.memory_space<vmem>>, vector<1x128x128xbf16>
    %262 = vector.shape_cast %261 : vector<1x128x128xbf16> to vector<128x128xbf16>
    %cst_70 = arith.constant dense<0.000000e+00> : vector<4x128xf32>
    %263 = tpu.matmul %260, %262, %cst_70 {dimension_numbers = #tpu.dot_dimension_numbers<[1], [0], [0], [1], [0, 0, 1, 1], [], []>} : vector<4x128xbf16>, vector<128x128xbf16>, vector<4x128xf32> -> vector<4x128xf32>
    %264 = vector.extract_strided_slice %263 {offsets = [0, 0], sizes = [1, 128], strides = [1, 1]} : vector<4x128xf32> to vector<1x128xf32>
    %265 = vector.extract_strided_slice %263 {offsets = [1, 0], sizes = [1, 128], strides = [1, 1]} : vector<4x128xf32> to vector<1x128xf32>
    %266 = arith.addf %264, %265 : vector<1x128xf32>
    %267 = vector.extract_strided_slice %263 {offsets = [2, 0], sizes = [1, 128], strides = [1, 1]} : vector<4x128xf32> to vector<1x128xf32>
    %268 = vector.extract_strided_slice %263 {offsets = [3, 0], sizes = [1, 128], strides = [1, 1]} : vector<4x128xf32> to vector<1x128xf32>
    %269 = arith.addf %267, %268 : vector<1x128xf32>
    %270 = arith.mulf %269, %1 : vector<1x128xf32>
    %cst_71 = arith.constant 1.000000e-30 : f32
    %271 = vector.broadcast %cst_71 : f32 to vector<1x128xf32>
    %272 = arith.maximumf %266, %271 : vector<1x128xf32>
    %273 = math.log %272 : vector<1x128xf32>
    %274 = arith.addf %270, %273 : vector<1x128xf32>
    %cst_72 = arith.constant 0.000000e+00 : f32
    %275 = vector.broadcast %cst_72 : f32 to vector<1x128xf32>
    %276 = arith.select %3, %274, %275 : vector<1x128xi1>, vector<1x128xf32>
    %277 = arith.truncf %276 : vector<1x128xf32> to vector<1x128xbf16>
    %278 = arith.extf %277 : vector<1x128xbf16> to vector<1x128xf32>
    %279 = arith.subf %276, %278 : vector<1x128xf32>
    %280 = tpu.concatenate %278, %279 in 0 : vector<1x128xf32>, vector<1x128xf32> -> vector<2x128xf32>
    %281 = arith.truncf %280 : vector<2x128xf32> to vector<2x128xbf16>
    %c0_73 = arith.constant 0 : index
    %c0_74 = arith.constant 0 : index
    %c0_75 = arith.constant 0 : index
    %282 = vector.load %arg4[%c0_73, %c0_74, %c0_75] : memref<1x128x256xbf16, #tpu.memory_space<vmem>>, vector<1x128x256xbf16>
    %283 = vector.shape_cast %282 : vector<1x128x256xbf16> to vector<128x256xbf16>
    %cst_76 = arith.constant dense<0.000000e+00> : vector<2x256xf32>
    %284 = tpu.matmul %281, %283, %cst_76 {dimension_numbers = #tpu.dot_dimension_numbers<[1], [0], [0], [1], [0, 0, 1, 1], [], []>} : vector<2x128xbf16>, vector<128x256xbf16>, vector<2x256xf32> -> vector<2x256xf32>
    %285 = vector.extract_strided_slice %284 {offsets = [0, 0], sizes = [1, 256], strides = [1, 1]} : vector<2x256xf32> to vector<1x256xf32>
    %286 = vector.extract_strided_slice %284 {offsets = [1, 0], sizes = [1, 256], strides = [1, 1]} : vector<2x256xf32> to vector<1x256xf32>
    %287 = arith.addf %285, %286 : vector<1x256xf32>
    %288 = vector.extract_strided_slice %287 {offsets = [0, 0], sizes = [1, 128], strides = [1, 1]} : vector<1x256xf32> to vector<1x128xf32>
    %289 = vector.extract_strided_slice %287 {offsets = [0, 128], sizes = [1, 128], strides = [1, 1]} : vector<1x256xf32> to vector<1x128xf32>
    %290 = arith.maximumf %288, %289 : vector<1x128xf32>
    %291 = arith.subf %288, %290 : vector<1x128xf32>
    %292 = math.exp %291 : vector<1x128xf32>
    %293 = arith.subf %289, %290 : vector<1x128xf32>
    %294 = math.exp %293 : vector<1x128xf32>
    %295 = arith.addf %292, %294 : vector<1x128xf32>
    %296 = tpu.reciprocal %295 {approx = true} : vector<1x128xf32> -> vector<1x128xf32>
    %297 = arith.mulf %292, %296 : vector<1x128xf32>
    %c0_77 = arith.constant 0 : index
    %c0_78 = arith.constant 0 : index
    %c0_79 = arith.constant 0 : index
    %298 = vector.load %arg8[%c0_77, %c0_78, %c0_79] : memref<1x1x128xf32, #tpu.memory_space<vmem>>, vector<1x1x128xf32>
    %299 = vector.shape_cast %298 : vector<1x1x128xf32> to vector<1x128xf32>
    %300 = vector.shape_cast %297 : vector<1x128xf32> to vector<1x1x128xf32>
    tpu.vector_store %arg8[%c0_77, %c0_78, %c0_79], %300 {strides = array<i32>} : memref<1x1x128xf32, #tpu.memory_space<vmem>>, vector<1x1x128xf32>,
    return
  }
  func.func @transform_0(%arg0: i32) -> (i32, i32, i32) {
    %c0_i32 = arith.constant 0 : i32
    %c0_i32_0 = arith.constant 0 : i32
    %c0_i32_1 = arith.constant 0 : i32
    return %arg0, %c0_i32, %c0_i32_0 : i32, i32, i32
  }
  func.func @transform_1(%arg0: i32) -> (i32, i32, i32) {
    %c0_i32 = arith.constant 0 : i32
    %c0_i32_0 = arith.constant 0 : i32
    %c0_i32_1 = arith.constant 0 : i32
    return %arg0, %c0_i32, %c0_i32_0 : i32, i32, i32
  }
  func.func @transform_2(%arg0: i32) -> (i32, i32, i32) {
    %c0_i32 = arith.constant 0 : i32
    %c0_i32_0 = arith.constant 0 : i32
    %c0_i32_1 = arith.constant 0 : i32
    return %arg0, %c0_i32, %c0_i32_0 : i32, i32, i32
  }
  func.func @transform_3(%arg0: i32) -> (i32, i32, i32) {
    %c0_i32 = arith.constant 0 : i32
    %c0_i32_0 = arith.constant 0 : i32
    %c0_i32_1 = arith.constant 0 : i32
    return %arg0, %c0_i32, %c0_i32_0 : i32, i32, i32
  }
  func.func @transform_4(%arg0: i32) -> (i32, i32, i32) {
    %c0_i32 = arith.constant 0 : i32
    %c0_i32_0 = arith.constant 0 : i32
    %c0_i32_1 = arith.constant 0 : i32
    return %arg0, %c0_i32, %c0_i32_0 : i32, i32, i32
  }
  func.func @transform_5(%arg0: i32) -> (i32, i32, i32) {
    %c0_i32 = arith.constant 0 : i32
    %c0_i32_0 = arith.constant 0 : i32
    %c0_i32_1 = arith.constant 0 : i32
    return %arg0, %c0_i32, %c0_i32_0 : i32, i32, i32
  }
  func.func @transform_6(%arg0: i32) -> (i32, i32, i32) {
    %c0_i32 = arith.constant 0 : i32
    %c0_i32_0 = arith.constant 0 : i32
    %c0_i32_1 = arith.constant 0 : i32
    return %arg0, %c0_i32, %c0_i32_0 : i32, i32, i32
  }
  func.func @transform_7(%arg0: i32) -> (i32, i32, i32) {
    %c0_i32 = arith.constant 0 : i32
    %c0_i32_0 = arith.constant 0 : i32
    %c0_i32_1 = arith.constant 0 : i32
    return %arg0, %c0_i32, %c0_i32_0 : i32, i32, i32
  }
}

</mosaic_0001>

<bundles_post_ra>
// kernel: squeeze.1
= control target key start
LH: loop header
LB: loop body
LE: loop exit
PB: predicated region body
PF: predicated region fallthrough
CT: control target
= control target key end

     0   :  { %s66_s8 = smov 122   ;;  %vm7_vm0 = vcmask 15360   ;;  %s67_s11 = smov 124   ;;  %s117_s0 = inlined_call_operand.vmem [shape: f32[2,16], index: 0, kind: input, shape index: {}]   ;;  %s118_s1 = inlined_call_operand.vmem [shape: f32[2,8,2], index: 1, kind: output, shape index: {}]  }
   0x1   :  { %v4_v0 = vld [vmem:[%s117_s0] sm:$0x3]  ;;  %s65_s0 = smov 126   ;;  %s68_s12 = smov 120  }
   0x2   :  { %5 = vst [vmem:[#allocation0] sm:$0x3] %v4_v0  ;;  %s69_s13 = smov 118   ;;  %s70_s14 = smov 116  }
   0x3   :  { %s71_s15 = smov 114  }
   0x9   :  { %v9_v1 = vld [vmem:[#allocation0] sm:$0x3]  }
   0xa   :  { %v21_v2 = vld [vmem:[#allocation0] sm:$0x3]   ;;  %10 = vrot.lane.b32.xlu0 %v9_v1, %s65_s0 }
   0xb   :  { %22 = vrot.lane.b32.xlu1 %v21_v2, %s66_s8  ;;  %v15_v3 = vld [vmem:[#allocation0] sm:$0x3]  }
   0xc   :  { %v27_v4 = vld [vmem:[#allocation0] sm:$0x3]  }
   0xd   :  { %v6_v5 = vld [vmem:[#allocation0] sm:$0x3]  }
   0xe   :  { %8 = vst.msk [vmem:[%s118_s1] ss:$8 sm:$0x3] %vm7_vm0, %v6_v5   ;;  %16 = vrot.lane.b32.xlu0 %v15_v3, %s67_s11  ;;  %v33_v6 = vld [vmem:[#allocation0] sm:$0x3]  }
   0xf   :  { %28 = vrot.lane.b32.xlu1 %v27_v4, %s68_s12  ;;  %v39_v7 = vld [vmem:[#allocation0] sm:$0x3]  }
  0x10   :  { %v45_v8 = vld [vmem:[#allocation0] sm:$0x3]  }
  0x12   :  { %34 = vrot.lane.b32.xlu0 %v33_v6, %s69_s13 }
  0x13   :  { %40 = vrot.lane.b32.xlu1 %v39_v7, %s70_s14 }
  0x16   :  { %46 = vrot.lane.b32.xlu0 %v45_v8, %s71_s15 }
  0x7c   :  { %v11_v9 = vpop.permute.xlu0 %10  }
  0x7d   :  { %v23_v10 = vpop.permute.xlu1 %22   ;;  %51 = vst.msk [vmem:[%s118_s1 + $0x1] ss:$8 sm:$0x3] %vm7_vm0, %v11_v9  }
  0x7e   :  { %53 = vst.msk [vmem:[%s118_s1 + $0x3] ss:$8 sm:$0x3] %vm7_vm0, %v23_v10  }
  0x80   :  { %v17_v11 = vpop.permute.xlu0 %16  }
  0x81   :  { %v29_v12 = vpop.permute.xlu1 %28   ;;  %52 = vst.msk [vmem:[%s118_s1 + $0x2] ss:$8 sm:$0x3] %vm7_vm0, %v17_v11  }
  0x82   :  { %54 = vst.msk [vmem:[%s118_s1 + $0x4] ss:$8 sm:$0x3] %vm7_vm0, %v29_v12  }
  0x84   :  { %v35_v13 = vpop.permute.xlu0 %34  }
  0x85   :  { %v41_v14 = vpop.permute.xlu1 %40   ;;  %55 = vst.msk [vmem:[%s118_s1 + $0x5] ss:$8 sm:$0x3] %vm7_vm0, %v35_v13  }
  0x86   :  { %56 = vst.msk [vmem:[%s118_s1 + $0x6] ss:$8 sm:$0x3] %vm7_vm0, %v41_v14  }
  0x88   :  { %v47_v15 = vpop.permute.xlu0 %46  }
  0x89   :  { %57 = vst.msk [vmem:[%s118_s1 + $0x7] ss:$8 sm:$0x3] %vm7_vm0, %v47_v15  }

// kernel: bp_forward.1
= control target key start
LH: loop header
LB: loop body
LE: loop exit
PB: predicated region body
PF: predicated region fallthrough
CT: control target
= control target key end

     0   :  { %s2318_s24 = smov 0   ;;  %s2748_s0 = inlined_call_operand.vmem [shape: bf16[2,128,256], index: 0, kind: input, shape index: {}]   ;;  %s2749_s1 = inlined_call_operand.vmem [shape: bf16[2,128,128], index: 1, kind: input, shape index: {}]   ;;  %s2750_s2 = inlined_call_operand.vmem [shape: bf16[2,128,128], index: 2, kind: input, shape index: {}]   ;;  %s2751_s3 = inlined_call_operand.vmem [shape: bf16[2,128,256], index: 3, kind: input, shape index: {}]   ;;  %s2752_s4 = inlined_call_operand.vmem [shape: f32[2,24,128], index: 4, kind: input, shape index: {}]   ;;  %s2753_s5 = inlined_call_operand.vmem [shape: f32[2,24,128], index: 5, kind: input, shape index: {}]   ;;  %s2754_s6 = inlined_call_operand.vmem [shape: f32[2,1,128], index: 6, kind: input, shape index: {}]   ;;  %s2755_s7 = inlined_call_operand.vmem [shape: f32[2,1,128], index: 7, kind: output, shape index: {}]  }
   0x1 LB: > { %s1840_s25 = sadd.s32 4294967295, %s2271_s24   ;;  %p1844_p0 = scmp.ge.s32.totalorder %s2271_s24, 1  ;;  %s2271_s24 = sphi %s2318_s24, %s17_s24  }
   0x2   : > { %p295_p1 = scmp.lt.s32.totalorder %s2271_s24, 3 }
   0x4   : > { %p296_p2 = pnand %p1844_p0, %p295_p1 }
   0x6   : > { %299 = sbr.rel (%p296_p2) target bundleno = 4016 (0xfb0), region = 48 }
   0xd   : > { %p353_p3 = scmp.lt.s32.totalorder %s1840_s25, 1  ;;  %v2758_v0 = vmov 0   ;;  %v2274_v17 = vmov 0.0|0.0   ;;  %v2756_v19 = vmov 0.0   ;;  %vm2276_vm0 = vmmov 0  }
   0xe   : > { %527 = vmatprep.mubr.bf16.mxu0 %v2758_v0  ;;  %1981 = vmatprep.subr.bf16.mxu1 %v2756_v19  ;;  %vm562_vm1 = vcmask 1040384   ;;  %v673_v53 = vlaneseq  ;;  %vm710_vm2 = vcmask 1041408   ;;  %vm712_vm3 = vcmask 1042432  }
   0xf   : > { %s2767_s25 = smov (!%p353_p3, %s1840_s25), 1  ;;  %1997 = vmatprep.mubr.msk.bf16.mxu1 %vm2276_vm0, %v2756_v19 }
  0x10   : > { %s1905_s26 = sshll.u32 %s2767_s25, 7  ;;  %s1906_s30 = sshll.u32 %s2767_s25, 6  ;;  %v2445_v54 = vshrl.u32 %v673_v53, 7 }
  0x11   : > { %s357_s29 = scalar_lea.vmem %s2748_s0, %s1905_s26  ;;  %s362_s10 = scalar_lea.vmem %s2749_s1, %s1906_s30 }
  0x12   : > { %v2335_v1 = vld [vmem:[%s357_s29 + $0x4] ss:$8 sps:$4 sm:$0xff]   ;;  %v2337_v2 = vld [vmem:[%s357_s29] ss:$8 sps:$4 sm:$0xff]   ;;  %v2340_v3 = vld [vmem:[%s357_s29 + $0x14] ss:$8 sps:$4 sm:$0xff]   ;;  %s367_s17 = scalar_lea.vmem %s2750_s2, %s1906_s30  ;;  %s385_s23 = scalar_lea.vmem %s2754_s6, %s2767_s25 }
  0x13   : > { %495 = vmatprep.subr.bf16.mxu0 %v2335_v1  ;;  %v2343_v4 = vld [vmem:[%s357_s29 + $0x10] ss:$8 sps:$4 sm:$0xff]   ;;  %v2346_v5 = vld [vmem:[%s357_s29 + $0x24] ss:$8 sps:$4 sm:$0xff]   ;;  %v2349_v6 = vld [vmem:[%s357_s29 + $0x20] ss:$8 sps:$4 sm:$0xff]   ;;  %s388_s8 = scalar_lea.vmem %s2755_s7, %s2767_s25 }
  0x14   : > { %496 = vmatpush1.bf16.msra.mxu0 %v2337_v2  ;;  %v2352_v7 = vld [vmem:[%s357_s29 + $0x34] ss:$8 sps:$4 sm:$0xff]   ;;  %v2355_v8 = vld [vmem:[%s357_s29 + $0x30] ss:$8 sps:$4 sm:$0xff]   ;;  %v2358_v9 = vld [vmem:[%s357_s29 + $0x44] ss:$8 sps:$4 sm:$0xff]  }
  0x15   : > { %497 = vmatprep.subr.bf16.mxu0 %v2340_v3  ;;  %v2361_v10 = vld [vmem:[%s357_s29 + $0x40] ss:$8 sps:$4 sm:$0xff]   ;;  %v2364_v11 = vld [vmem:[%s357_s29 + $0x54] ss:$8 sps:$4 sm:$0xff]   ;;  %v2367_v12 = vld [vmem:[%s357_s29 + $0x50] ss:$8 sps:$4 sm:$0xff]  }
  0x16   : > { %v2370_v13 = vld [vmem:[%s357_s29 + $0x64] ss:$8 sps:$4 sm:$0xff]   ;;  %v2373_v14 = vld [vmem:[%s357_s29 + $0x60] ss:$8 sps:$4 sm:$0xff]   ;;  %v2376_v15 = vld [vmem:[%s357_s29 + $0x74] ss:$8 sps:$4 sm:$0xff]  }
  0x17   : > { %v2379_v16 = vld [vmem:[%s357_s29 + $0x70] ss:$8 sps:$4 sm:$0xff]   ;;  %v2389_v18 = vld [vmem:[%s362_s10] sm:$0xff]   ;;  %v2395_v20 = vld [vmem:[%s362_s10 + $0x8] sm:$0xff]   ;;  %s2141_s11 = smul.u32 24, %s2767_s25  ;;  %v2449_v57 = vsub.s32 0, %v2445_v54  ;;  %s372_s29 = scalar_lea.vmem %s2751_s3, %s1905_s26 }
  0x18   : > { %498 = vmatpush1.bf16.msra.mxu0 %v2343_v4  ;;  %1982 = vmatpush3.bf16.msra.mxu1 %v2389_v18  ;;  %v2399_v21 = vld [vmem:[%s362_s10 + $0x10] sm:$0xff]   ;;  %v2403_v22 = vld [vmem:[%s362_s10 + $0x18] sm:$0xff]   ;;  %v2407_v23 = vld [vmem:[%s362_s10 + $0x20] sm:$0xff]  }
  0x19   : > { %499 = vmatprep.subr.bf16.mxu0 %v2346_v5  ;;  %1983 = vmatprep.subr.bf16.mxu1 %v2756_v19  ;;  %v2411_v24 = vld [vmem:[%s362_s10 + $0x28] sm:$0xff]   ;;  %v2418_v25 = vld [vmem:[%s362_s10 + $0x30] sm:$0xff]   ;;  %v2422_v26 = vld [vmem:[%s362_s10 + $0x38] sm:$0xff]   ;;  %s377_s14 = scalar_lea.vmem %s2752_s4, %s2141_s11  ;;  %s382_s20 = scalar_lea.vmem %s2753_s5, %s2141_s11 }
  0x1a   : > { %v2456_v62 = vld [vmem:[%s377_s14 + $0x10] sm:$0xff]  ;;  %v2458_v63 = vld [vmem:[%s377_s14] sm:$0xff] }
  0x1c   : > { %500 = vmatpush1.bf16.msra.mxu0 %v2349_v6  ;;  %1984 = vmatpush3.bf16.msra.mxu1 %v2395_v20 }
  0x1d   : > { %501 = vmatprep.subr.bf16.mxu0 %v2352_v7  ;;  %1985 = vmatprep.subr.bf16.mxu1 %v2756_v19 }
  0x20   : > { %502 = vmatpush1.bf16.msra.mxu0 %v2355_v8  ;;  %1986 = vmatpush3.bf16.msra.mxu1 %v2399_v21 }
  0x21   : > { %503 = vmatprep.subr.bf16.mxu0 %v2358_v9  ;;  %1987 = vmatprep.subr.bf16.mxu1 %v2756_v19 }
  0x24   : > { %504 = vmatpush1.bf16.msra.mxu0 %v2361_v10  ;;  %1988 = vmatpush3.bf16.msra.mxu1 %v2403_v22 }
  0x25   : > { %505 = vmatprep.subr.bf16.mxu0 %v2364_v11  ;;  %1989 = vmatprep.subr.bf16.mxu1 %v2756_v19 }
  0x28   : > { %506 = vmatpush1.bf16.msra.mxu0 %v2367_v12  ;;  %1990 = vmatpush3.bf16.msra.mxu1 %v2407_v23 }
  0x29   : > { %507 = vmatprep.subr.bf16.mxu0 %v2370_v13  ;;  %1991 = vmatprep.subr.bf16.mxu1 %v2756_v19 }
  0x2c   : > { %508 = vmatpush1.bf16.msra.mxu0 %v2373_v14  ;;  %1992 = vmatpush3.bf16.msra.mxu1 %v2411_v24 }
  0x2d   : > { %509 = vmatprep.subr.bf16.mxu0 %v2376_v15  ;;  %1993 = vmatprep.subr.bf16.mxu1 %v2756_v19 }
  0x30   : > { %510 = vmatpush1.bf16.msra.mxu0 %v2379_v16  ;;  %1994 = vmatpush3.bf16.msra.mxu1 %v2418_v25 }
  0x31   : > { %2001 = vmatprep.subr.bf16.mxu0 %v2756_v19  ;;  %1995 = vmatprep.subr.bf16.mxu1 %v2756_v19 }
  0x33   : > { %528 = vmatmul.mubr.bf16.vlgmr.msra.gmra.mrb[0].mxu0 %v2274_v17 }
  0x34   : > { %2017 = vmatprep.mubr.msk.bf16.mxu0 %vm2276_vm0, %v2756_v19  ;;  %1996 = vmatpush3.bf16.msra.mxu1 %v2422_v26 }
  0x35   : > { %866 = vmatprep.subr.bf16.mxu1 %v2335_v1 }
 0x106   : > { %v529_v27 = vpop.f32.mrb[0].mxu0 }
 0x107   : > { %v538_v28 = vrot.slane %v529_v27, 1  ;;  %v531_v29 = vpop.f32.mrb[1].mxu0 }
 0x108   : > { %v539_v30 = vrot.slane %v531_v29, 1  ;;  %v533_v31 = vpop.f32.mrb[2].mxu0 }
 0x109   : > { %v542_v32 = vadd.f32 %v538_v28, %v529_v27  ;;  %v534_v33 = vpop.f32.mrb[3].mxu0  ;;  %v2471_v31 = vld [vmem:[%s367_s17] sm:$0xff]  }
 0x10a   : > { %v543_v34 = vadd.f32 %v539_v30, %v531_v29  ;;  %v2463_v29 = vld [vmem:[%s377_s14 + $0x8] sm:$0xff]  ;;  %2002 = vmatpush3.bf16.msra.mxu0 %v2471_v31  ;;  %v2479_v33 = vld [vmem:[%s367_s17 + $0x10] sm:$0xff]  }
 0x10b   : > { %2003 = vmatprep.subr.bf16.mxu0 %v2756_v19 }
 0x10c   : > { %v544_v35 = vmax.f32 %v542_v32, %v543_v34 }
 0x10e   : > { %v545_v36 = vsub.f32 %v542_v32, %v544_v35  ;;  %v548_v37 = vsub.f32 %v543_v34, %v544_v35  ;;  %v2482_v34 = vld [vmem:[%s367_s17 + $0x18] sm:$0xff]  }
 0x110   : > { %v546_v38 = vmul.f32 1.442695, %v545_v36  ;;  %v549_v39 = vmul.f32 1.442695, %v548_v37  ;;  %v2490_v36 = vld [vmem:[%s367_s17 + $0x28] sm:$0xff]   ;;  %v2494_v37 = vld [vmem:[%s367_s17 + $0x30] sm:$0xff]  }
 0x112   : > { %2219 = vpow2.f32 %v546_v38  ;;  %v2498_v38 = vld [vmem:[%s367_s17 + $0x38] sm:$0xff]  }
 0x113   : > { %2221 = vpow2.f32 %v549_v39 }
 0x11c   : > { %v2220_v40 = vpop.eup %2219 }
 0x11d   : > { %v2222_v41 = vpop.eup %2221 }
 0x11e   : > { %v551_v42 = vadd.f32 %v2222_v41, %v2220_v40  ;;  %v2508_v40 = vld [vmem:[%s382_s20] sm:$0xff]  ;;  %v2510_v41 = vld [vmem:[%s382_s20 + $0x8] sm:$0xff] }
 0x11f   : > { %2762 = vst [vmem:[#allocation2_spill] sm:$0xff] %v2508_v40 }
 0x120   : > { %2223 = vlog2.f32 %v551_v42  ;;  %v2512_v42 = vld [vmem:[%s382_s20 + $0x10] sm:$0xff] }
 0x12a   : > { %v2224_v43 = vpop.eup %2223 }
 0x12b   : > { %v553_v44 = vmul.f32 0.6931472, %v2224_v43 }
 0x12d   : > { %v554_v45 = vadd.f32 %v553_v44, %v544_v35  ;;  %v2486_v35 = vld [vmem:[%s367_s17 + $0x20] sm:$0xff]  }
 0x12f   : > { %v555_v46 = vsub.f32 %v542_v32, %v554_v45  ;;  %v2475_v32 = vld [vmem:[%s367_s17 + $0x8] sm:$0xff]  }
 0x130   : > { %2004 = vmatpush3.bf16.msra.mxu0 %v2475_v32 }
 0x131   : > { %v556_v47 = vpack.c.bf16 %v555_v46, %v555_v46  ;;  %2005 = vmatprep.subr.bf16.mxu0 %v2756_v19 }
 0x133   : > { %v557_v48 = vunpack.c.l.bf16 %v556_v47 }
 0x134   : > { %2006 = vmatpush3.bf16.msra.mxu0 %v2479_v33 }
 0x135   : > { %v558_v49 = vsub.f32 %v555_v46, %v557_v48  ;;  %2007 = vmatprep.subr.bf16.mxu0 %v2756_v19 }
 0x137   : > { %v560_v50 = vrot.slane %v558_v49, 7 }
 0x138   : > { %2008 = vmatpush3.bf16.msra.mxu0 %v2482_v34 }
 0x139   : > { %v563_v51 = vsel %vm562_vm1, %v557_v48, %v560_v50  ;;  %2009 = vmatprep.subr.bf16.mxu0 %v2756_v19 }
 0x13a   : > { %v564_v52 = vpack.c.bf16 %v563_v51, %v563_v51 }
 0x13c   : > { %1998 = vmatmul.mubr.bf16.vlgmr.msra.gmra.mrb[0].mxu1 %v564_v52  ;;  %2010 = vmatpush3.bf16.msra.mxu0 %v2486_v35 }
 0x13d   : > { %867 = vmatpush1.bf16.msra.mxu1 %v2337_v2  ;;  %898 = vmatprep.mubr.bf16.mxu1 %v2758_v0 }
 0x13e   : > { %868 = vmatprep.subr.bf16.mxu1 %v2340_v3  ;;  %2011 = vmatprep.subr.bf16.mxu0 %v2756_v19 }
 0x140   : > { %2012 = vmatpush3.bf16.msra.mxu0 %v2490_v36 }
 0x141   : > { %869 = vmatpush1.bf16.msra.mxu1 %v2343_v4  ;;  %2013 = vmatprep.subr.bf16.mxu0 %v2756_v19 }
 0x142   : > { %870 = vmatprep.subr.bf16.mxu1 %v2346_v5 }
 0x144   : > { %2014 = vmatpush3.bf16.msra.mxu0 %v2494_v37 }
 0x145   : > { %871 = vmatpush1.bf16.msra.mxu1 %v2349_v6  ;;  %2015 = vmatprep.subr.bf16.mxu0 %v2756_v19 }
 0x146   : > { %872 = vmatprep.subr.bf16.mxu1 %v2352_v7 }
 0x148   : > { %2016 = vmatpush3.bf16.msra.mxu0 %v2498_v38 }
 0x149   : > { %873 = vmatpush1.bf16.msra.mxu1 %v2355_v8  ;;  %2021 = vmatprep.subr.bf16.mxu0 %v2756_v19 }
 0x14a   : > { %874 = vmatprep.subr.bf16.mxu1 %v2358_v9 }
 0x14d   : > { %875 = vmatpush1.bf16.msra.mxu1 %v2361_v10 }
 0x14e   : > { %876 = vmatprep.subr.bf16.mxu1 %v2364_v11 }
 0x151   : > { %877 = vmatpush1.bf16.msra.mxu1 %v2367_v12 }
 0x152   : > { %878 = vmatprep.subr.bf16.mxu1 %v2370_v13 }
 0x155   : > { %879 = vmatpush1.bf16.msra.mxu1 %v2373_v14 }
 0x156   : > { %880 = vmatprep.subr.bf16.mxu1 %v2376_v15 }
 0x159   : > { %881 = vmatpush1.bf16.msra.mxu1 %v2379_v16 }
 0x15a   : > { %2041 = vmatprep.subr.bf16.mxu1 %v2756_v19 }
 0x20f   : > { %v663_v55 = vpop.f32.mrb[0].mxu1 }
 0x210   : > { %v670_v56 = vrot.slane %v663_v55, 1  ;;  %v1999_v58 = vpop.f32.mrb[1].mxu1 }
 0x211   : > { %v666_v59 = vpop.f32.mrb[2].mxu1 }
 0x212   : > { %v672_v60 = vadd.f32 %v670_v56, %v663_v55  ;;  %v2000_v61 = vpop.f32.mrb[3].mxu1 }
 0x214   : > { %v676_v17 = vrot.slane %v672_v60, %v2449_v57 }
 0x216   : > { %v679_v27 = vadd.f32 %v676_v17, %v2456_v62  ;;  %v677_v28 = vadd.f32 %v676_v17, %v2458_v63  ;;  %v678_v30 = vadd.f32 %v676_v17, %v2463_v29 }
 0x218   : > { %684 = vmax.xlane.f32.xlu1 %v679_v27  ;;  %680 = vmax.xlane.f32.xlu0 %v677_v28 }
 0x21c   : > { %682 = vmax.xlane.f32.xlu0 %v678_v30 }
 0x2a5   : > { %v681_v39 = vpop.xlane.xlu0 %680  ;;  %v685_v43 = vpop.xlane.xlu1 %684 }
 0x2a6   : > { %v686_v45 = vmul.f32 %v681_v39, %v2508_v40  ;;  %v688_v47 = vmul.f32 %v685_v43, %v2512_v42 }
 0x2a9   : > { %v683_v44 = vpop.xlane.xlu0 %682 }
 0x2aa   : > { %v687_v46 = vmul.f32 %v683_v44, %v2510_v41 }
 0x2ac   : > { %v689_v48 = vadd.f32 %v687_v46, %v686_v45 }
 0x2ae   : > { %v690_v49 = vadd.f32 %v689_v48, %v688_v47 }
 0x2b0   : > { %v691_v50 = vrot.slane %v690_v49, 4 }
 0x2b2   : > { %v692_v51 = vadd.f32 %v691_v50, %v690_v49 }
 0x2b4   : > { %v693_v52 = vrot.slane %v692_v51, 2 }
 0x2b6   : > { %v694_v53 = vadd.f32 %v693_v52, %v692_v51 }
 0x2b8   : > { %v695_v55 = vrot.slane %v694_v53, 1 }
 0x2ba   : > { %v696_v56 = vadd.f32 %v695_v55, %v694_v53 }
 0x2bc   : > { %v697_v58 = vsub.f32 %v672_v60, %v696_v56  ;;  %v703_v27 = vpack.c.bf16 %v696_v56, %v696_v56 }
 0x2be   : > { %v698_v59 = vmul.f32 1.442695, %v697_v58  ;;  %v704_v39 = vunpack.c.l.bf16 %v703_v27 }
 0x2c0   : > { %2225 = vpow2.f32 %v698_v59  ;;  %v705_v43 = vsub.f32 %v696_v56, %v704_v39  ;;  %v2277_v56 = vmov 1966171168   ;;  %v2542_v59 = vld [vmem:[%s385_s23] sm:$0x1] }
 0x2c1   : > { %v839_v58 = vunpack.c.l.s4 %v2277_v56  ;;  %vm391_vm4 = vcmp.gt.f32.partialorder %v2542_v59, 0.0 }
 0x2ca   : > { %v2226_v61 = vpop.eup %2225 }
 0x2cb   : > { %v700_v17 = vpack.c.bf16 %v2226_v61, %v2226_v61 }
 0x2cd   : > { %v701_v28 = vunpack.c.l.bf16 %v700_v17  ;;  %v840_v17 = vunpack.c.0.s8 %v839_v58 }
 0x2cf   : > { %v702_v30 = vsub.f32 %v2226_v61, %v701_v28  ;;  %v2546_v61 = vrot.slane %v2542_v59, %v2449_v57 }
 0x2d1   : > { %v707_v44 = vrot.slane %v702_v30, 7 }
 0x2d3   : > { %v709_v45 = vsel %vm562_vm1, %v701_v28, %v707_v44  ;;  %v2550_v44 = vsub.s32 %v840_v17, %v2445_v54 }
 0x2d4   : > { %v711_v46 = vsel %vm710_vm2, %v709_v45, %v704_v39 }
 0x2d5   : > { %v713_v47 = vsel %vm712_vm3, %v711_v46, %v705_v43 }
 0x2d6   : > { %v714_v48 = vpack.c.bf16 %v713_v47, %v713_v47 }
 0x2d8   : > { %2018 = vmatmul.mubr.bf16.vlgmr.msra.gmra.mrb[4].mxu0 %v714_v48 }
 0x2d9   : > { %2022 = vmatpush3.bf16.msra.mxu0 %v2389_v18  ;;  %2037 = vmatprep.mubr.msk.bf16.mxu0 %vm2276_vm0, %v2756_v19 }
 0x2da   : > { %2023 = vmatprep.subr.bf16.mxu0 %v2756_v19 }
 0x2dd   : > { %2024 = vmatpush3.bf16.msra.mxu0 %v2395_v20 }
 0x2de   : > { %2025 = vmatprep.subr.bf16.mxu0 %v2756_v19 }
 0x2e1   : > { %2026 = vmatpush3.bf16.msra.mxu0 %v2399_v21 }
 0x2e2   : > { %2027 = vmatprep.subr.bf16.mxu0 %v2756_v19 }
 0x2e5   : > { %2028 = vmatpush3.bf16.msra.mxu0 %v2403_v22 }
 0x2e6   : > { %2029 = vmatprep.subr.bf16.mxu0 %v2756_v19 }
 0x2e9   : > { %2030 = vmatpush3.bf16.msra.mxu0 %v2407_v23 }
 0x2ea   : > { %2031 = vmatprep.subr.bf16.mxu0 %v2756_v19 }
 0x2ed   : > { %2032 = vmatpush3.bf16.msra.mxu0 %v2411_v24 }
 0x2ee   : > { %2033 = vmatprep.subr.bf16.mxu0 %v2756_v19 }
 0x2f1   : > { %2034 = vmatpush3.bf16.msra.mxu0 %v2418_v25 }
 0x2f2   : > { %2035 = vmatprep.subr.bf16.mxu0 %v2756_v19 }
 0x2f5   : > { %2036 = vmatpush3.bf16.msra.mxu0 %v2422_v26 }
 0x2f6   : > { %1100 = vmatprep.subr.bf16.mxu0 %v2335_v1 }
 0x3ab   : > { %v813_v60 = vpop.f32.mrb[4].mxu0 }
 0x3ac   : > { %v820_v49 = vrot.slane %v813_v60, 1  ;;  %v2019_v50 = vpop.f32.mrb[5].mxu0 }
 0x3ad   : > { %v816_v51 = vpop.f32.mrb[6].mxu0 }
 0x3ae   : > { %v822_v52 = vadd.f32 %v820_v49, %v813_v60  ;;  %v2020_v53 = vpop.f32.mrb[7].mxu0 }
 0x3b0   : > { %v830_v55 = vmax.f32 %v822_v52, 1e-30  ;;  %v829_v30 = vmul.f32 %v2546_v61, %v822_v52 }
 0x3b2   : > { %2227 = vlog2.f32 %v830_v55 }
 0x3bc   : > { %v2228_v27 = vpop.eup %2227 }
 0x3bd   : > { %v832_v28 = vmul.f32 0.6931472, %v2228_v27 }
 0x3bf   : > { %v834_v39 = vrot.slane %v832_v28, 6 }
 0x3c1   : > { %v836_v43 = vadd.f32 %v834_v39, %v829_v30 }
 0x3c3   : > { %v844_v45 = vrot.slane %v836_v43, %v2550_v44 }
 0x3c5   : > { %v851_v46 = vrot.slane %v844_v45, %v2550_v44 }
 0x3c7   : > { %v852_v47 = vcombine.high %v851_v46, %v851_v46 }
 0x3c9   : > { %v854_v48 = vsel %vm391_vm4, %v852_v47, 0.0 }
 0x3ca   : > { %v855_v60 = vpack.c.bf16 %v854_v48, %v854_v48 }
 0x3cc   : > { %v856_v49 = vunpack.c.l.bf16 %v855_v60 }
 0x3ce   : > { %v857_v50 = vsub.f32 %v854_v48, %v856_v49 }
 0x3d0   : > { %v862_v51 = vrot.slane %v857_v50, %v2449_v57 }
 0x3d2   : > { %v864_v52 = vsel %vm562_vm1, %v856_v49, %v862_v51 }
 0x3d3   : > { %v865_v54 = vpack.c.bf16 %v864_v52, %v864_v52 }
 0x3d5   : > { %899 = vmatmul.mubr.bf16.vlgmr.msra.gmra.mrb[4].mxu1 %v865_v54 }
 0x3d6   : > { %2042 = vmatpush3.bf16.msra.mxu1 %v2471_v31  ;;  %2057 = vmatprep.mubr.msk.bf16.mxu1 %vm2276_vm0, %v2756_v19 }
 0x3d7   : > { %2043 = vmatprep.subr.bf16.mxu1 %v2756_v19 }
 0x3da   : > { %2044 = vmatpush3.bf16.msra.mxu1 %v2475_v32 }
 0x3db   : > { %2045 = vmatprep.subr.bf16.mxu1 %v2756_v19 }
 0x3de   : > { %2046 = vmatpush3.bf16.msra.mxu1 %v2479_v33 }
 0x3df   : > { %2047 = vmatprep.subr.bf16.mxu1 %v2756_v19 }
 0x3e2   : > { %2048 = vmatpush3.bf16.msra.mxu1 %v2482_v34 }
 0x3e3   : > { %2049 = vmatprep.subr.bf16.mxu1 %v2756_v19 }
 0x3e6   : > { %2050 = vmatpush3.bf16.msra.mxu1 %v2486_v35 }
 0x3e7   : > { %2051 = vmatprep.subr.bf16.mxu1 %v2756_v19 }
 0x3ea   : > { %2052 = vmatpush3.bf16.msra.mxu1 %v2490_v36 }
 0x3eb   : > { %2053 = vmatprep.subr.bf16.mxu1 %v2756_v19 }
 0x3ee   : > { %2054 = vmatpush3.bf16.msra.mxu1 %v2494_v37 }
 0x3ef   : > { %2055 = vmatprep.subr.bf16.mxu1 %v2756_v19 }
 0x3f2   : > { %2056 = vmatpush3.bf16.msra.mxu1 %v2498_v38 }
 0x3f3   : > { %2061 = vmatprep.subr.bf16.mxu1 %v2756_v19 }
 0x4a8   : > { %v900_v53 = vpop.f32.mrb[4].mxu1 }
 0x4a9   : > { %v909_v55 = vrot.slane %v900_v53, 1  ;;  %v902_v56 = vpop.f32.mrb[5].mxu1 }
 0x4aa   : > { %v910_v58 = vrot.slane %v902_v56, 1  ;;  %v904_v17 = vpop.f32.mrb[6].mxu1 }
 0x4ab   : > { %v913_v27 = vadd.f32 %v909_v55, %v900_v53  ;;  %v905_v28 = vpop.f32.mrb[7].mxu1 }
 0x4ac   : > { %v914_v30 = vadd.f32 %v910_v58, %v902_v56 }
 0x4ae   : > { %v915_v39 = vmax.f32 %v913_v27, %v914_v30 }
 0x4b0   : > { %v916_v43 = vsub.f32 %v913_v27, %v915_v39  ;;  %v919_v45 = vsub.f32 %v914_v30, %v915_v39 }
 0x4b2   : > { %v917_v46 = vmul.f32 1.442695, %v916_v43  ;;  %v920_v47 = vmul.f32 1.442695, %v919_v45 }
 0x4b4   : > { %2229 = vpow2.f32 %v917_v46 }
 0x4b5   : > { %2231 = vpow2.f32 %v920_v47 }
 0x4be   : > { %v2230_v48 = vpop.eup %2229 }
 0x4bf   : > { %v2232_v60 = vpop.eup %2231 }
 0x4c0   : > { %v922_v49 = vadd.f32 %v2232_v60, %v2230_v48 }
 0x4c2   : > { %2233 = vlog2.f32 %v922_v49 }
 0x4cc   : > { %v2234_v50 = vpop.eup %2233 }
 0x4cd   : > { %v924_v51 = vmul.f32 0.6931472, %v2234_v50 }
 0x4cf   : > { %v925_v52 = vadd.f32 %v924_v51, %v915_v39 }
 0x4d1   : > { %v926_v54 = vsub.f32 %v913_v27, %v925_v52 }
 0x4d3   : > { %v927_v19 = vpack.c.bf16 %v926_v54, %v926_v54 }
 0x4d5   : > { %v928_v17 = vunpack.c.l.bf16 %v927_v19  ;;  %v2763_v19 = vmov 0.0  }
 0x4d7   : > { %v929_v53 = vsub.f32 %v926_v54, %v928_v17 }
 0x4d9   : > { %v931_v55 = vrot.slane %v929_v53, 7 }
 0x4db   : > { %v933_v56 = vsel %vm562_vm1, %v928_v17, %v931_v55 }
 0x4dc   : > { %v934_v58 = vpack.c.bf16 %v933_v56, %v933_v56 }
 0x4de   : > { %2038 = vmatmul.mubr.bf16.vlgmr.msra.gmra.mrb[8].mxu0 %v934_v58 }
 0x4df   : > { %1101 = vmatpush1.bf16.msra.mxu0 %v2337_v2  ;;  %1132 = vmatprep.mubr.bf16.mxu0 %v2758_v0 }
 0x4e0   : > { %1102 = vmatprep.subr.bf16.mxu0 %v2340_v3 }
 0x4e3   : > { %1103 = vmatpush1.bf16.msra.mxu0 %v2343_v4 }
 0x4e4   : > { %1104 = vmatprep.subr.bf16.mxu0 %v2346_v5 }
 0x4e7   : > { %1105 = vmatpush1.bf16.msra.mxu0 %v2349_v6 }
 0x4e8   : > { %1106 = vmatprep.subr.bf16.mxu0 %v2352_v7 }
 0x4eb   : > { %1107 = vmatpush1.bf16.msra.mxu0 %v2355_v8 }
 0x4ec   : > { %1108 = vmatprep.subr.bf16.mxu0 %v2358_v9 }
 0x4ef   : > { %1109 = vmatpush1.bf16.msra.mxu0 %v2361_v10 }
 0x4f0   : > { %1110 = vmatprep.subr.bf16.mxu0 %v2364_v11 }
 0x4f3   : > { %1111 = vmatpush1.bf16.msra.mxu0 %v2367_v12 }
 0x4f4   : > { %1112 = vmatprep.subr.bf16.mxu0 %v2370_v13 }
 0x4f7   : > { %1113 = vmatpush1.bf16.msra.mxu0 %v2373_v14 }
 0x4f8   : > { %1114 = vmatprep.subr.bf16.mxu0 %v2376_v15 }
 0x4fb   : > { %1115 = vmatpush1.bf16.msra.mxu0 %v2379_v16 }
 0x4fc   : > { %2081 = vmatprep.subr.bf16.mxu0 %v2763_v19 }
 0x5b1   : > { %v969_v27 = vpop.f32.mrb[8].mxu0 }
 0x5b2   : > { %v976_v28 = vrot.slane %v969_v27, 1  ;;  %v2039_v30 = vpop.f32.mrb[9].mxu0 }
 0x5b3   : > { %v972_v39 = vpop.f32.mrb[10].mxu0 }
 0x5b4   : > { %v978_v43 = vadd.f32 %v976_v28, %v969_v27  ;;  %v2040_v45 = vpop.f32.mrb[11].mxu0 }
 0x5b6   : > { %v982_v46 = vrot.slane %v978_v43, %v2449_v57 }
 0x5b8   : > { %v984_v47 = vadd.f32 %v982_v46, %v2463_v29  ;;  %v983_v48 = vadd.f32 %v982_v46, %v2458_v63  ;;  %v985_v60 = vadd.f32 %v982_v46, %v2456_v62 }
 0x5ba   : > { %988 = vmax.xlane.f32.xlu0 %v984_v47  ;;  %986 = vmax.xlane.f32.xlu1 %v983_v48 }
 0x5be   : > { %990 = vmax.xlane.f32.xlu1 %v985_v60 }
 0x647   : > { %v989_v49 = vpop.xlane.xlu0 %988  ;;  %v987_v50 = vpop.xlane.xlu1 %986 }
 0x648   : > { %v993_v51 = vmul.f32 %v989_v49, %v2510_v41  ;;  %v992_v52 = vmul.f32 %v987_v50, %v2508_v40 }
 0x64a   : > { %v995_v17 = vadd.f32 %v993_v51, %v992_v52 }
 0x64b   : > { %v991_v54 = vpop.xlane.xlu1 %990 }
 0x64c   : > { %v994_v53 = vmul.f32 %v991_v54, %v2512_v42 }
 0x64e   : > { %v996_v55 = vadd.f32 %v995_v17, %v994_v53 }
 0x650   : > { %v997_v56 = vrot.slane %v996_v55, 4 }
 0x652   : > { %v998_v58 = vadd.f32 %v997_v56, %v996_v55 }
 0x654   : > { %v999_v27 = vrot.slane %v998_v58, 2 }
 0x656   : > { %v1000_v28 = vadd.f32 %v999_v27, %v998_v58 }
 0x658   : > { %v1001_v30 = vrot.slane %v1000_v28, 1 }
 0x65a   : > { %v1002_v39 = vadd.f32 %v1001_v30, %v1000_v28 }
 0x65c   : > { %v1003_v45 = vsub.f32 %v978_v43, %v1002_v39  ;;  %v1009_v48 = vpack.c.bf16 %v1002_v39, %v1002_v39 }
 0x65e   : > { %v1004_v46 = vmul.f32 1.442695, %v1003_v45  ;;  %v1010_v0 = vunpack.c.l.bf16 %v1009_v48 }
 0x660   : > { %2235 = vpow2.f32 %v1004_v46  ;;  %v1011_v51 = vsub.f32 %v1002_v39, %v1010_v0 }
 0x66a   : > { %v2236_v47 = vpop.eup %2235 }
 0x66b   : > { %v1006_v60 = vpack.c.bf16 %v2236_v47, %v2236_v47 }
 0x66d   : > { %v1007_v49 = vunpack.c.l.bf16 %v1006_v60 }
 0x66f   : > { %v1008_v50 = vsub.f32 %v2236_v47, %v1007_v49 }
 0x671   : > { %v1013_v40 = vrot.slane %v1008_v50, 7 }
 0x673   : > { %v1015_v52 = vsel %vm562_vm1, %v1007_v49, %v1013_v40 }
 0x674   : > { %v1016_v54 = vsel %vm710_vm2, %v1015_v52, %v1010_v0 }
 0x675   : > { %v1017_v17 = vsel %vm712_vm3, %v1016_v54, %v1011_v51 }
 0x676   : > { %v1018_v53 = vpack.c.bf16 %v1017_v17, %v1017_v17 }
 0x678   : > { %2058 = vmatmul.mubr.bf16.vlgmr.msra.gmra.mrb[8].mxu1 %v1018_v53 }
 0x679   : > { %2062 = vmatpush3.bf16.msra.mxu1 %v2389_v18  ;;  %2077 = vmatprep.mubr.msk.bf16.mxu1 %vm2276_vm0, %v2763_v19 }
 0x67a   : > { %2063 = vmatprep.subr.bf16.mxu1 %v2763_v19 }
 0x67d   : > { %2064 = vmatpush3.bf16.msra.mxu1 %v2395_v20 }
 0x67e   : > { %2065 = vmatprep.subr.bf16.mxu1 %v2763_v19 }
 0x681   : > { %2066 = vmatpush3.bf16.msra.mxu1 %v2399_v21 }
 0x682   : > { %2067 = vmatprep.subr.bf16.mxu1 %v2763_v19 }
 0x685   : > { %2068 = vmatpush3.bf16.msra.mxu1 %v2403_v22 }
 0x686   : > { %2069 = vmatprep.subr.bf16.mxu1 %v2763_v19 }
 0x689   : > { %2070 = vmatpush3.bf16.msra.mxu1 %v2407_v23 }
 0x68a   : > { %2071 = vmatprep.subr.bf16.mxu1 %v2763_v19 }
 0x68d   : > { %2072 = vmatpush3.bf16.msra.mxu1 %v2411_v24 }
 0x68e   : > { %2073 = vmatprep.subr.bf16.mxu1 %v2763_v19 }
 0x691   : > { %2074 = vmatpush3.bf16.msra.mxu1 %v2418_v25 }
 0x692   : > { %2075 = vmatprep.subr.bf16.mxu1 %v2763_v19 }
 0x695   : > { %2076 = vmatpush3.bf16.msra.mxu1 %v2422_v26 }
 0x696   : > { %1334 = vmatprep.subr.bf16.mxu1 %v2335_v1 }
 0x74b   : > { %v1053_v0 = vpop.f32.mrb[8].mxu1 }
 0x74c   : > { %v1060_v40 = vrot.slane %v1053_v0, 1  ;;  %v2059_v43 = vpop.f32.mrb[9].mxu1 }
 0x74d   : > { %v1056_v55 = vpop.f32.mrb[10].mxu1 }
 0x74e   : > { %v1062_v56 = vadd.f32 %v1060_v40, %v1053_v0  ;;  %v2060_v58 = vpop.f32.mrb[11].mxu1 }
 0x750   : > { %v1064_v27 = vmax.f32 %v1062_v56, 1e-30  ;;  %v1063_v39 = vmul.f32 %v1062_v56, %v2546_v61 }
 0x752   : > { %2237 = vlog2.f32 %v1064_v27 }
 0x75c   : > { %v2238_v28 = vpop.eup %2237 }
 0x75d   : > { %v1066_v30 = vmul.f32 0.6931472, %v2238_v28 }
 0x75f   : > { %v1068_v45 = vrot.slane %v1066_v30, 6 }
 0x761   : > { %v1070_v46 = vadd.f32 %v1068_v45, %v1063_v39 }
 0x763   : > { %v1078_v47 = vrot.slane %v1070_v46, %v2550_v44 }
 0x765   : > { %v1085_v48 = vrot.slane %v1078_v47, %v2550_v44 }
 0x767   : > { %v1086_v60 = vcombine.high %v1085_v48, %v1085_v48 }
 0x769   : > { %v1088_v1 = vsel %vm391_vm4, %v1086_v60, 0.0 }
 0x76a   : > { %v1089_v49 = vpack.c.bf16 %v1088_v1, %v1088_v1 }
 0x76c   : > { %v1090_v50 = vunpack.c.l.bf16 %v1089_v49 }
 0x76e   : > { %v1091_v51 = vsub.f32 %v1088_v1, %v1090_v50 }
 0x770   : > { %v1096_v52 = vrot.slane %v1091_v51, %v2449_v57 }
 0x772   : > { %v1098_v54 = vsel %vm562_vm1, %v1090_v50, %v1096_v52 }
 0x773   : > { %v1099_v17 = vpack.c.bf16 %v1098_v54, %v1098_v54 }
 0x775   : > { %1133 = vmatmul.mubr.bf16.vlgmr.msra.gmra.mrb[12].mxu0 %v1099_v17 }
 0x776   : > { %2082 = vmatpush3.bf16.msra.mxu0 %v2471_v31  ;;  %2097 = vmatprep.mubr.msk.bf16.mxu0 %vm2276_vm0, %v2763_v19 }
 0x777   : > { %2083 = vmatprep.subr.bf16.mxu0 %v2763_v19 }
 0x77a   : > { %2084 = vmatpush3.bf16.msra.mxu0 %v2475_v32 }
 0x77b   : > { %2085 = vmatprep.subr.bf16.mxu0 %v2763_v19 }
 0x77e   : > { %2086 = vmatpush3.bf16.msra.mxu0 %v2479_v33 }
 0x77f   : > { %2087 = vmatprep.subr.bf16.mxu0 %v2763_v19 }
 0x782   : > { %2088 = vmatpush3.bf16.msra.mxu0 %v2482_v34 }
 0x783   : > { %2089 = vmatprep.subr.bf16.mxu0 %v2763_v19 }
 0x786   : > { %2090 = vmatpush3.bf16.msra.mxu0 %v2486_v35 }
 0x787   : > { %2091 = vmatprep.subr.bf16.mxu0 %v2763_v19 }
 0x78a   : > { %2092 = vmatpush3.bf16.msra.mxu0 %v2490_v36 }
 0x78b   : > { %2093 = vmatprep.subr.bf16.mxu0 %v2763_v19 }
 0x78e   : > { %2094 = vmatpush3.bf16.msra.mxu0 %v2494_v37 }
 0x78f   : > { %2095 = vmatprep.subr.bf16.mxu0 %v2763_v19 }
 0x792   : > { %2096 = vmatpush3.bf16.msra.mxu0 %v2498_v38 }
 0x793   : > { %2101 = vmatprep.subr.bf16.mxu0 %v2763_v19 }
 0x848   : > { %v1134_v53 = vpop.f32.mrb[12].mxu0 }
 0x849   : > { %v1143_v0 = vrot.slane %v1134_v53, 1  ;;  %v1136_v40 = vpop.f32.mrb[13].mxu0 }
 0x84a   : > { %v1144_v43 = vrot.slane %v1136_v40, 1  ;;  %v1138_v55 = vpop.f32.mrb[14].mxu0 }
 0x84b   : > { %v1147_v56 = vadd.f32 %v1143_v0, %v1134_v53  ;;  %v1139_v58 = vpop.f32.mrb[15].mxu0 }
 0x84c   : > { %v1148_v27 = vadd.f32 %v1144_v43, %v1136_v40  ;;  %v2764_v43 = vmov 0  }
 0x84e   : > { %v1149_v28 = vmax.f32 %v1147_v56, %v1148_v27 }
 0x850   : > { %v1150_v30 = vsub.f32 %v1147_v56, %v1149_v28  ;;  %v1153_v39 = vsub.f32 %v1148_v27, %v1149_v28 }
 0x852   : > { %v1151_v45 = vmul.f32 1.442695, %v1150_v30  ;;  %v1154_v46 = vmul.f32 1.442695, %v1153_v39 }
 0x854   : > { %2239 = vpow2.f32 %v1151_v45 }
 0x855   : > { %2241 = vpow2.f32 %v1154_v46 }
 0x85e   : > { %v2240_v47 = vpop.eup %2239 }
 0x85f   : > { %v2242_v48 = vpop.eup %2241 }
 0x860   : > { %v1156_v60 = vadd.f32 %v2242_v48, %v2240_v47 }
 0x862   : > { %2243 = vlog2.f32 %v1156_v60 }
 0x86c   : > { %v2244_v1 = vpop.eup %2243 }
 0x86d   : > { %v1158_v49 = vmul.f32 0.6931472, %v2244_v1 }
 0x86f   : > { %v1159_v50 = vadd.f32 %v1158_v49, %v1149_v28 }
 0x871   : > { %v1160_v51 = vsub.f32 %v1147_v56, %v1159_v50 }
 0x873   : > { %v1161_v52 = vpack.c.bf16 %v1160_v51, %v1160_v51 }
 0x875   : > { %v1162_v54 = vunpack.c.l.bf16 %v1161_v52 }
 0x877   : > { %v1163_v17 = vsub.f32 %v1160_v51, %v1162_v54 }
 0x879   : > { %v1165_v53 = vrot.slane %v1163_v17, 7 }
 0x87b   : > { %v1167_v0 = vsel %vm562_vm1, %v1162_v54, %v1165_v53 }
 0x87c   : > { %v1168_v40 = vpack.c.bf16 %v1167_v0, %v1167_v0 }
 0x87e   : > { %2078 = vmatmul.mubr.bf16.vlgmr.msra.gmra.mrb[12].mxu1 %v1168_v40 }
 0x87f   : > { %1335 = vmatpush1.bf16.msra.mxu1 %v2337_v2  ;;  %1366 = vmatprep.mubr.bf16.mxu1 %v2764_v43 }
 0x880   : > { %1336 = vmatprep.subr.bf16.mxu1 %v2340_v3 }
 0x883   : > { %1337 = vmatpush1.bf16.msra.mxu1 %v2343_v4 }
 0x884   : > { %1338 = vmatprep.subr.bf16.mxu1 %v2346_v5 }
 0x887   : > { %1339 = vmatpush1.bf16.msra.mxu1 %v2349_v6 }
 0x888   : > { %1340 = vmatprep.subr.bf16.mxu1 %v2352_v7 }
 0x88b   : > { %1341 = vmatpush1.bf16.msra.mxu1 %v2355_v8 }
 0x88c   : > { %1342 = vmatprep.subr.bf16.mxu1 %v2358_v9 }
 0x88f   : > { %1343 = vmatpush1.bf16.msra.mxu1 %v2361_v10 }
 0x890   : > { %1344 = vmatprep.subr.bf16.mxu1 %v2364_v11 }
 0x893   : > { %1345 = vmatpush1.bf16.msra.mxu1 %v2367_v12 }
 0x894   : > { %1346 = vmatprep.subr.bf16.mxu1 %v2370_v13 }
 0x897   : > { %1347 = vmatpush1.bf16.msra.mxu1 %v2373_v14 }
 0x898   : > { %1348 = vmatprep.subr.bf16.mxu1 %v2376_v15  ;;  %v2765_v15 = vld [vmem:[#allocation2_spill] sm:$0xff] }
 0x89b   : > { %1349 = vmatpush1.bf16.msra.mxu1 %v2379_v16 }
 0x89c   : > { %2121 = vmatprep.subr.bf16.mxu1 %v2763_v19 }
 0x951   : > { %v1203_v2 = vpop.f32.mrb[12].mxu1 }
 0x952   : > { %v1210_v3 = vrot.slane %v1203_v2, 1  ;;  %v2079_v4 = vpop.f32.mrb[13].mxu1 }
 0x953   : > { %v1206_v5 = vpop.f32.mrb[14].mxu1 }
 0x954   : > { %v1212_v6 = vadd.f32 %v1210_v3, %v1203_v2  ;;  %v2080_v7 = vpop.f32.mrb[15].mxu1 }
 0x956   : > { %v1216_v8 = vrot.slane %v1212_v6, %v2449_v57 }
 0x958   : > { %v1218_v9 = vadd.f32 %v1216_v8, %v2463_v29  ;;  %v1217_v10 = vadd.f32 %v1216_v8, %v2458_v63  ;;  %v1219_v11 = vadd.f32 %v1216_v8, %v2456_v62 }
 0x95a   : > { %1222 = vmax.xlane.f32.xlu1 %v1218_v9  ;;  %1220 = vmax.xlane.f32.xlu0 %v1217_v10 }
 0x95e   : > { %1224 = vmax.xlane.f32.xlu0 %v1219_v11 }
 0x9e7   : > { %v1223_v12 = vpop.xlane.xlu1 %1222  ;;  %v1221_v13 = vpop.xlane.xlu0 %1220 }
 0x9e8   : > { %v1227_v14 = vmul.f32 %v1223_v12, %v2510_v41  ;;  %v1226_v16 = vmul.f32 %v1221_v13, %v2765_v15 }
 0x9ea   : > { %v1229_v56 = vadd.f32 %v1227_v14, %v1226_v16 }
 0x9eb   : > { %v1225_v55 = vpop.xlane.xlu0 %1224 }
 0x9ec   : > { %v1228_v58 = vmul.f32 %v1225_v55, %v2512_v42 }
 0x9ee   : > { %v1230_v27 = vadd.f32 %v1229_v56, %v1228_v58 }
 0x9f0   : > { %v1231_v28 = vrot.slane %v1230_v27, 4 }
 0x9f2   : > { %v1232_v30 = vadd.f32 %v1231_v28, %v1230_v27 }
 0x9f4   : > { %v1233_v39 = vrot.slane %v1232_v30, 2 }
 0x9f6   : > { %v1234_v45 = vadd.f32 %v1233_v39, %v1232_v30 }
 0x9f8   : > { %v1235_v46 = vrot.slane %v1234_v45, 1 }
 0x9fa   : > { %v1236_v47 = vadd.f32 %v1235_v46, %v1234_v45 }
 0x9fc   : > { %v1237_v48 = vsub.f32 %v1212_v6, %v1236_v47  ;;  %v1243_v49 = vpack.c.bf16 %v1236_v47, %v1236_v47 }
 0x9fe   : > { %v1238_v60 = vmul.f32 1.442695, %v1237_v48  ;;  %v1244_v52 = vunpack.c.l.bf16 %v1243_v49 }
 0xa00   : > { %2245 = vpow2.f32 %v1238_v60  ;;  %v1245_v53 = vsub.f32 %v1236_v47, %v1244_v52 }
 0xa0a   : > { %v2246_v1 = vpop.eup %2245 }
 0xa0b   : > { %v1240_v50 = vpack.c.bf16 %v2246_v1, %v2246_v1 }
 0xa0d   : > { %v1241_v51 = vunpack.c.l.bf16 %v1240_v50 }
 0xa0f   : > { %v1242_v54 = vsub.f32 %v2246_v1, %v1241_v51 }
 0xa11   : > { %v1247_v17 = vrot.slane %v1242_v54, 7 }
 0xa13   : > { %v1249_v0 = vsel %vm562_vm1, %v1241_v51, %v1247_v17 }
 0xa14   : > { %v1250_v40 = vsel %vm710_vm2, %v1249_v0, %v1244_v52 }
 0xa15   : > { %v1251_v2 = vsel %vm712_vm3, %v1250_v40, %v1245_v53 }
 0xa16   : > { %v1252_v3 = vpack.c.bf16 %v1251_v2, %v1251_v2 }
 0xa18   : > { %2098 = vmatmul.mubr.bf16.vlgmr.msra.gmra.mrb[16].mxu0 %v1252_v3 }
 0xa19   : > { %2102 = vmatpush3.bf16.msra.mxu0 %v2389_v18  ;;  %2117 = vmatprep.mubr.msk.bf16.mxu0 %vm2276_vm0, %v2763_v19 }
 0xa1a   : > { %2103 = vmatprep.subr.bf16.mxu0 %v2763_v19 }
 0xa1d   : > { %2104 = vmatpush3.bf16.msra.mxu0 %v2395_v20 }
 0xa1e   : > { %2105 = vmatprep.subr.bf16.mxu0 %v2763_v19 }
 0xa21   : > { %2106 = vmatpush3.bf16.msra.mxu0 %v2399_v21 }
 0xa22   : > { %2107 = vmatprep.subr.bf16.mxu0 %v2763_v19 }
 0xa25   : > { %2108 = vmatpush3.bf16.msra.mxu0 %v2403_v22 }
 0xa26   : > { %2109 = vmatprep.subr.bf16.mxu0 %v2763_v19 }
 0xa29   : > { %2110 = vmatpush3.bf16.msra.mxu0 %v2407_v23 }
 0xa2a   : > { %2111 = vmatprep.subr.bf16.mxu0 %v2763_v19 }
 0xa2d   : > { %2112 = vmatpush3.bf16.msra.mxu0 %v2411_v24 }
 0xa2e   : > { %2113 = vmatprep.subr.bf16.mxu0 %v2763_v19 }
 0xa31   : > { %2114 = vmatpush3.bf16.msra.mxu0 %v2418_v25 }
 0xa32   : > { %2115 = vmatprep.subr.bf16.mxu0 %v2763_v19 }
 0xa35   : > { %2116 = vmatpush3.bf16.msra.mxu0 %v2422_v26 }
 0xaeb   : > { %v1287_v18 = vpop.f32.mrb[16].mxu0 }
 0xaec   : > { %v1294_v20 = vrot.slane %v1287_v18, 1  ;;  %v2099_v21 = vpop.f32.mrb[17].mxu0 }
 0xaed   : > { %v1290_v22 = vpop.f32.mrb[18].mxu0 }
 0xaee   : > { %v1296_v4 = vadd.f32 %v1294_v20, %v1287_v18  ;;  %v2100_v5 = vpop.f32.mrb[19].mxu0 }
 0xaf0   : > { %v1298_v6 = vmax.f32 %v1296_v4, 1e-30  ;;  %v1297_v24 = vmul.f32 %v1296_v4, %v2546_v61 }
 0xaf2   : > { %2247 = vlog2.f32 %v1298_v6 }
 0xafc   : > { %v2248_v23 = vpop.eup %2247 }
 0xafd   : > { %v1300_v7 = vmul.f32 0.6931472, %v2248_v23 }
 0xaff   : > { %v1302_v8 = vrot.slane %v1300_v7, 6 }
 0xb01   : > { %v1304_v9 = vadd.f32 %v1302_v8, %v1297_v24 }
 0xb03   : > { %v1312_v25 = vrot.slane %v1304_v9, %v2550_v44 }
 0xb05   : > { %v1319_v10 = vrot.slane %v1312_v25, %v2550_v44 }
 0xb07   : > { %v1320_v11 = vcombine.high %v1319_v10, %v1319_v10 }
 0xb09   : > { %v1322_v26 = vsel %vm391_vm4, %v1320_v11, 0.0 }
 0xb0a   : > { %v1323_v12 = vpack.c.bf16 %v1322_v26, %v1322_v26 }
 0xb0c   : > { %v1324_v13 = vunpack.c.l.bf16 %v1323_v12 }
 0xb0e   : > { %v1325_v14 = vsub.f32 %v1322_v26, %v1324_v13 }
 0xb10   : > { %v1330_v16 = vrot.slane %v1325_v14, %v2449_v57 }
 0xb12   : > { %v1332_v55 = vsel %vm562_vm1, %v1324_v13, %v1330_v16 }
 0xb13   : > { %v1333_v56 = vpack.c.bf16 %v1332_v55, %v1332_v55 }
 0xb15   : > { %1367 = vmatmul.mubr.bf16.vlgmr.msra.gmra.mrb[16].mxu1 %v1333_v56 }
 0xb16   : > { %2122 = vmatpush3.bf16.msra.mxu1 %v2471_v31  ;;  %2137 = vmatprep.mubr.msk.bf16.mxu1 %vm2276_vm0, %v2763_v19 }
 0xb17   : > { %2123 = vmatprep.subr.bf16.mxu1 %v2763_v19 }
 0xb1a   : > { %2124 = vmatpush3.bf16.msra.mxu1 %v2475_v32 }
 0xb1b   : > { %2125 = vmatprep.subr.bf16.mxu1 %v2763_v19 }
 0xb1e   : > { %2126 = vmatpush3.bf16.msra.mxu1 %v2479_v33 }
 0xb1f   : > { %2127 = vmatprep.subr.bf16.mxu1 %v2763_v19 }
 0xb22   : > { %2128 = vmatpush3.bf16.msra.mxu1 %v2482_v34 }
 0xb23   : > { %2129 = vmatprep.subr.bf16.mxu1 %v2763_v19 }
 0xb26   : > { %2130 = vmatpush3.bf16.msra.mxu1 %v2486_v35 }
 0xb27   : > { %2131 = vmatprep.subr.bf16.mxu1 %v2763_v19 }
 0xb2a   : > { %2132 = vmatpush3.bf16.msra.mxu1 %v2490_v36 }
 0xb2b   : > { %2133 = vmatprep.subr.bf16.mxu1 %v2763_v19 }
 0xb2e   : > { %2134 = vmatpush3.bf16.msra.mxu1 %v2494_v37 }
 0xb2f   : > { %2135 = vmatprep.subr.bf16.mxu1 %v2763_v19 }
 0xb32   : > { %2136 = vmatpush3.bf16.msra.mxu1 %v2498_v38 }
 0xbe8   : > { %v1368_v31 = vpop.f32.mrb[16].mxu1 }
 0xbe9   : > { %v1377_v32 = vrot.slane %v1368_v31, 1  ;;  %v1370_v33 = vpop.f32.mrb[17].mxu1 }
 0xbea   : > { %v1378_v34 = vrot.slane %v1370_v33, 1  ;;  %v1372_v58 = vpop.f32.mrb[18].mxu1 }
 0xbeb   : > { %v1381_v27 = vadd.f32 %v1377_v32, %v1368_v31  ;;  %v1373_v28 = vpop.f32.mrb[19].mxu1  ;;  %v2197_v58 = vld [vmem:[%s372_s29 + $0x4] ss:$8 sps:$4 sm:$0xff]  }
 0xbec   : > { %v1382_v35 = vadd.f32 %v1378_v34, %v1370_v33  ;;  %1664 = vmatprep.subr.bf16.mxu0 %v2197_v58  ;;  %v2200_v28 = vld [vmem:[%s372_s29 + $0x14] ss:$8 sps:$4 sm:$0xff]  }
 0xbee   : > { %v1383_v30 = vmax.f32 %v1381_v27, %v1382_v35 }
 0xbf0   : > { %v1384_v39 = vsub.f32 %v1381_v27, %v1383_v30  ;;  %v1387_v45 = vsub.f32 %v1382_v35, %v1383_v30  ;;  %v2198_v35 = vld [vmem:[%s372_s29 + $0x10] ss:$8 sps:$4 sm:$0xff]  }
 0xbf2   : > { %v1385_v36 = vmul.f32 1.442695, %v1384_v39  ;;  %v1388_v46 = vmul.f32 1.442695, %v1387_v45  ;;  %v2201_v39 = vld [vmem:[%s372_s29 + $0x20] ss:$8 sps:$4 sm:$0xff]  }
 0xbf3   : > { %v2206_v45 = vld [vmem:[%s372_s29 + $0x34] ss:$8 sps:$4 sm:$0xff]  }
 0xbf4   : > { %2249 = vpow2.f32 %v1385_v36  ;;  %v2204_v36 = vld [vmem:[%s372_s29 + $0x30] ss:$8 sps:$4 sm:$0xff]  }
 0xbf5   : > { %2251 = vpow2.f32 %v1388_v46  ;;  %v2209_v46 = vld [vmem:[%s372_s29 + $0x44] ss:$8 sps:$4 sm:$0xff]  }
 0xbfe   : > { %v2250_v37 = vpop.eup %2249 }
 0xbff   : > { %v2252_v47 = vpop.eup %2251 }
 0xc00   : > { %v1390_v19 = vadd.f32 %v2252_v47, %v2250_v37  ;;  %v2207_v37 = vld [vmem:[%s372_s29 + $0x40] ss:$8 sps:$4 sm:$0xff]   ;;  %v2212_v47 = vld [vmem:[%s372_s29 + $0x54] ss:$8 sps:$4 sm:$0xff]  }
 0xc02   : > { %2253 = vlog2.f32 %v1390_v19  ;;  %v2210_v19 = vld [vmem:[%s372_s29 + $0x50] ss:$8 sps:$4 sm:$0xff]  }
 0xc0c   : > { %v2254_v38 = vpop.eup %2253 }
 0xc0d   : > { %v1392_v48 = vmul.f32 0.6931472, %v2254_v38  ;;  %v2215_v38 = vld [vmem:[%s372_s29 + $0x64] ss:$8 sps:$4 sm:$0xff]  }
 0xc0f   : > { %v1393_v60 = vadd.f32 %v1392_v48, %v1383_v30  ;;  %v2203_v30 = vld [vmem:[%s372_s29 + $0x24] ss:$8 sps:$4 sm:$0xff]   ;;  %v2213_v48 = vld [vmem:[%s372_s29 + $0x60] ss:$8 sps:$4 sm:$0xff]  }
 0xc11   : > { %v1394_v1 = vsub.f32 %v1381_v27, %v1393_v60  ;;  %v2195_v27 = vld [vmem:[%s372_s29] ss:$8 sps:$4 sm:$0xff]   ;;  %v2218_v60 = vld [vmem:[%s372_s29 + $0x74] ss:$8 sps:$4 sm:$0xff]  }
 0xc13   : > { %v1395_v49 = vpack.c.bf16 %v1394_v1, %v1394_v1 }
 0xc15   : > { %v1396_v50 = vunpack.c.l.bf16 %v1395_v49 }
 0xc17   : > { %v1397_v51 = vsub.f32 %v1394_v1, %v1396_v50  ;;  %v2216_v1 = vld [vmem:[%s372_s29 + $0x70] ss:$8 sps:$4 sm:$0xff]  }
 0xc19   : > { %v1399_v52 = vrot.slane %v1397_v51, 7 }
 0xc1b   : > { %v1401_v54 = vsel %vm562_vm1, %v1396_v50, %v1399_v52 }
 0xc1c   : > { %v1402_v17 = vpack.c.bf16 %v1401_v54, %v1401_v54 }
 0xc1e   : > { %2118 = vmatmul.mubr.bf16.vlgmr.msra.gmra.mrb[20].mxu0 %v1402_v17 }
 0xc1f   : > { %1696 = vmatprep.mubr.bf16.mxu0 %v2764_v43  ;;  %1665 = vmatpush1.bf16.msra.mxu0 %v2195_v27 }
 0xc20   : > { %1666 = vmatprep.subr.bf16.mxu0 %v2200_v28 }
 0xc23   : > { %1667 = vmatpush1.bf16.msra.mxu0 %v2198_v35 }
 0xc24   : > { %1668 = vmatprep.subr.bf16.mxu0 %v2203_v30 }
 0xc27   : > { %1669 = vmatpush1.bf16.msra.mxu0 %v2201_v39 }
 0xc28   : > { %1670 = vmatprep.subr.bf16.mxu0 %v2206_v45 }
 0xc2b   : > { %1671 = vmatpush1.bf16.msra.mxu0 %v2204_v36 }
 0xc2c   : > { %1672 = vmatprep.subr.bf16.mxu0 %v2209_v46 }
 0xc2f   : > { %1673 = vmatpush1.bf16.msra.mxu0 %v2207_v37 }
 0xc30   : > { %1674 = vmatprep.subr.bf16.mxu0 %v2212_v47 }
 0xc33   : > { %1675 = vmatpush1.bf16.msra.mxu0 %v2210_v19 }
 0xc34   : > { %1676 = vmatprep.subr.bf16.mxu0 %v2215_v38 }
 0xc37   : > { %1677 = vmatpush1.bf16.msra.mxu0 %v2213_v48 }
 0xc38   : > { %1678 = vmatprep.subr.bf16.mxu0 %v2218_v60 }
 0xc3b   : > { %1679 = vmatpush1.bf16.msra.mxu0 %v2216_v1 }
 0xcf1   : > { %v1437_v53 = vpop.f32.mrb[20].mxu0 }
 0xcf2   : > { %v1444_v0 = vrot.slane %v1437_v53, 1  ;;  %v2119_v40 = vpop.f32.mrb[21].mxu0 }
 0xcf3   : > { %v1440_v2 = vpop.f32.mrb[22].mxu0 }
 0xcf4   : > { %v1446_v3 = vadd.f32 %v1444_v0, %v1437_v53  ;;  %v2120_v18 = vpop.f32.mrb[23].mxu0 }
 0xcf6   : > { %v1450_v20 = vrot.slane %v1446_v3, %v2449_v57 }
 0xcf8   : > { %v1452_v21 = vadd.f32 %v1450_v20, %v2463_v29  ;;  %v1451_v22 = vadd.f32 %v1450_v20, %v2458_v63  ;;  %v1453_v4 = vadd.f32 %v1450_v20, %v2456_v62 }
 0xcfa   : > { %1456 = vmax.xlane.f32.xlu0 %v1452_v21  ;;  %1454 = vmax.xlane.f32.xlu1 %v1451_v22 }
 0xcfe   : > { %1458 = vmax.xlane.f32.xlu1 %v1453_v4 }
 0xd87   : > { %v1457_v5 = vpop.xlane.xlu0 %1456  ;;  %v1455_v6 = vpop.xlane.xlu1 %1454 }
 0xd88   : > { %v1461_v43 = vmul.f32 %v1457_v5, %v2510_v41  ;;  %v1460_v23 = vmul.f32 %v1455_v6, %v2765_v15 }
 0xd8a   : > { %v1463_v24 = vadd.f32 %v1461_v43, %v1460_v23 }
 0xd8b   : > { %v1459_v7 = vpop.xlane.xlu1 %1458 }
 0xd8c   : > { %v1462_v8 = vmul.f32 %v1459_v7, %v2512_v42 }
 0xd8e   : > { %v1464_v9 = vadd.f32 %v1463_v24, %v1462_v8 }
 0xd90   : > { %v1465_v25 = vrot.slane %v1464_v9, 4 }
 0xd92   : > { %v1466_v29 = vadd.f32 %v1465_v25, %v1464_v9 }
 0xd94   : > { %v1467_v10 = vrot.slane %v1466_v29, 2 }
 0xd96   : > { %v1468_v63 = vadd.f32 %v1467_v10, %v1466_v29 }
 0xd98   : > { %v1469_v11 = vrot.slane %v1468_v63, 1 }
 0xd9a   : > { %v1470_v26 = vadd.f32 %v1469_v11, %v1468_v63 }
 0xd9c   : > { %v1471_v12 = vsub.f32 %v1446_v3, %v1470_v26  ;;  %v1477_v14 = vpack.c.bf16 %v1470_v26, %v1470_v26 }
 0xd9e   : > { %v1472_v62 = vmul.f32 1.442695, %v1471_v12  ;;  %v1478_v15 = vunpack.c.l.bf16 %v1477_v14 }
 0xda0   : > { %2255 = vpow2.f32 %v1472_v62  ;;  %v1479_v31 = vsub.f32 %v1470_v26, %v1478_v15 }
 0xdaa   : > { %v2256_v13 = vpop.eup %2255 }
 0xdab   : > { %v1474_v41 = vpack.c.bf16 %v2256_v13, %v2256_v13 }
 0xdad   : > { %v1475_v16 = vunpack.c.l.bf16 %v1474_v41 }
 0xdaf   : > { %v1476_v55 = vsub.f32 %v2256_v13, %v1475_v16 }
 0xdb1   : > { %v1481_v56 = vrot.slane %v1476_v55, 7 }
 0xdb3   : > { %v1483_v42 = vsel %vm562_vm1, %v1475_v16, %v1481_v56 }
 0xdb4   : > { %v1484_v32 = vsel %vm710_vm2, %v1483_v42, %v1478_v15 }
 0xdb5   : > { %v1485_v33 = vsel %vm712_vm3, %v1484_v32, %v1479_v31 }
 0xdb6   : > { %v1486_v34 = vpack.c.bf16 %v1485_v33, %v1485_v33 }
 0xdb8   : > { %2138 = vmatmul.mubr.bf16.vlgmr.msra.gmra.mrb[20].mxu1 %v1486_v34 }
 0xe8b   : > { %v1521_v49 = vpop.f32.mrb[20].mxu1 }
 0xe8c   : > { %v1528_v50 = vrot.slane %v1521_v49, 1  ;;  %v2139_v51 = vpop.f32.mrb[21].mxu1 }
 0xe8d   : > { %v1524_v52 = vpop.f32.mrb[22].mxu1 }
 0xe8e   : > { %v1530_v54 = vadd.f32 %v1528_v50, %v1521_v49  ;;  %v2140_v17 = vpop.f32.mrb[23].mxu1 }
 0xe90   : > { %v1532_v53 = vmax.f32 %v1530_v54, 1e-30  ;;  %v1531_v2 = vmul.f32 %v1530_v54, %v2546_v61 }
 0xe92   : > { %2257 = vlog2.f32 %v1532_v53 }
 0xe9c   : > { %v2258_v0 = vpop.eup %2257 }
 0xe9d   : > { %v1534_v40 = vmul.f32 0.6931472, %v2258_v0 }
 0xe9f   : > { %v1536_v3 = vrot.slane %v1534_v40, 6 }
 0xea1   : > { %v1538_v18 = vadd.f32 %v1536_v3, %v1531_v2 }
 0xea3   : > { %v1546_v20 = vrot.slane %v1538_v18, %v2550_v44 }
 0xea5   : > { %v1553_v21 = vrot.slane %v1546_v20, %v2550_v44 }
 0xea7   : > { %v1554_v22 = vcombine.high %v1553_v21, %v1553_v21 }
 0xea9   : > { %v1556_v4 = vsel %vm391_vm4, %v1554_v22, 0.0 }
 0xeaa   : > { %v1557_v5 = vpack.c.bf16 %v1556_v4, %v1556_v4 }
 0xeac   : > { %v1558_v6 = vunpack.c.l.bf16 %v1557_v5 }
 0xeae   : > { %v1559_v43 = vsub.f32 %v1556_v4, %v1558_v6 }
 0xeb0   : > { %v1564_v23 = vrot.slane %v1559_v43, %v2449_v57 }
 0xeb2   : > { %v1566_v7 = vsel %vm562_vm1, %v1558_v6, %v1564_v23 }
 0xeb3   : > { %v1567_v24 = vpack.c.bf16 %v1566_v7, %v1566_v7 }
 0xeb5   : > { %1697 = vmatmul.mubr.bf16.vlgmr.msra.gmra.mrb[24].mxu0 %v1567_v24 }
 0xf88   : > { %v1698_v61 = vpop.f32.mrb[24].mxu0 }
 0xf89   : > { %v1707_v8 = vrot.slane %v1698_v61, 1  ;;  %v1700_v9 = vpop.f32.mrb[25].mxu0 }
 0xf8a   : > { %v1708_v25 = vrot.slane %v1700_v9, 1  ;;  %v1702_v29 = vpop.f32.mrb[26].mxu0 }
 0xf8b   : > { %v1711_v44 = vadd.f32 %v1707_v8, %v1698_v61  ;;  %v1703_v10 = vpop.f32.mrb[27].mxu0 }
 0xf8c   : > { %v1712_v63 = vadd.f32 %v1708_v25, %v1700_v9 }
 0xf8e   : > { %v1713_v59 = vmax.f32 %v1711_v44, %v1712_v63 }
 0xf90   : > { %v1714_v11 = vsub.f32 %v1711_v44, %v1713_v59  ;;  %v1717_v26 = vsub.f32 %v1712_v63, %v1713_v59 }
 0xf92   : > { %v1715_v12 = vmul.f32 1.442695, %v1714_v11  ;;  %v1718_v62 = vmul.f32 1.442695, %v1717_v26 }
 0xf94   : > { %2259 = vpow2.f32 %v1715_v12 }
 0xf95   : > { %2261 = vpow2.f32 %v1718_v62 }
 0xf9e   : > { %v2260_v57 = vpop.eup %2259 }
 0xf9f   : > { %v2262_v13 = vpop.eup %2261 }
 0xfa0   : > { %v1720_v14 = vadd.f32 %v2262_v13, %v2260_v57 }
 0xfa2   : > { %2263 = vrcp.f32 %v1720_v14 }
 0xfac   : > { %v2264_v41 = vpop.eup %2263 }
 0xfad   : > { %v1722_v16 = vmul.f32 %v2264_v41, %v2260_v57 }
 0xfaf   : > { %1723 = vst [vmem:[%s388_s8] sm:$0x1] %v1722_v16 }
 0xfb0 PF: > { %s17_s24 = sadd.s32 1, %s2271_s24  }
 0xfb1   : > { %p14_p4 = scmp.ge.s32.totalorder %s17_s24, 4  }
 0xfb3   :  { %16 = sbr.rel (!%p14_p4) target bundleno = 1 (0x1), region = 96 }

</bundles_post_ra>
